<compile_context>
chip_gen: v7x
topology: tpu7x:2x2x1
jax: 0.10.0
libtpu: 0.0.40
codegen_flags: <defaults>
</compile_context>

<pallas_src>
import numpy as np
import jax
import jax.numpy as jnp
from jax import lax
from jax.experimental import pallas as pl
from jax.experimental.pallas import tpu as pltpu

# ----------------------------- model config ---------------------------------
B, S = 2, 8          # batch, sequence length
T = B * S            # flattened token count
VOCAB = 64           # word-embedding vocab
H = 32               # hidden size (bert_output_dim)
NH = 4               # attention heads
DH = H // NH         # head dim
L = 2                # number of transformer layers (layer_pulled = last)
I = 64               # FFN intermediate size
OUT = 16             # params['out_dim'] (add_linear=True)
NULL_IDX = 0
LN_EPS = 1e-12

# ----------------------------- packed-slab layout ----------------------------
WCOL = 3 * H + H + I          # per-layer weight-slab lane width: [wq|wk|wv|wo|wi]
VEC_W = 3 * H                 # vector-slab lane width (>= 3H, I, H, OUT)
ROW_LNE_G, ROW_LNE_B = 0, 1
R_BQKV, R_BO, R_LN1G, R_LN1B, R_BI, R_BO2, R_LN2G, R_LN2B = range(8)
ROW_BP = 2 + 8 * L
ROW_BA = ROW_BP + 1
N_VEC_ROWS = ROW_BA + 1

assert T <= H, "key-bias row is packed into the activation slab (needs T <= H)"
assert S & (S - 1) == 0, "in-kernel block-diagonal mask uses power-of-two S"
assert I <= VEC_W and OUT <= VEC_W and H <= VEC_W


def _lrow(l):
    return 2 + 8 * l


# ------------------------------ kernel helpers ------------------------------
def _layer_norm(x, g, b):
    mu = jnp.mean(x, axis=-1, keepdims=True)
    var = jnp.mean((x - mu) ** 2, axis=-1, keepdims=True)
    return (x - mu) * lax.rsqrt(var + LN_EPS) * g + b


def _gelu(x):
    # TODO(synk): BERT uses the exact erf-based GELU; the tanh approximation is
    # used here (tanh runs on the otherwise-idle EUP slot).  The pure-JAX
    # reference below uses the same approximation.
    return 0.5 * x * (1.0 + jnp.tanh(0.7978845608028654 * (x + 0.044715 * x * x * x)))


# ----------------------- fused encoder + head kernel -------------------------
def _encoder_kernel(x_ref, w_ref, w2_ref, vec_ref, out_ref):
    f32 = jnp.float32
    scale = 1.0 / float(DH) ** 0.5

    def vec(row, n):                       # (1, n) row of the packed vector slab
        return vec_ref[row:row + 1, :n]

    # In-kernel (T, T) additive attention bias: per-key padding bias broadcast
    # over queries, block-diagonal over batch elements.  -1e9 underflows to an
    # exactly-zero softmax weight in f32, so this is identical to per-batch
    # attention.  (S is a power of two -> batch-block test via bit masking.)
    key_bias = x_ref[T:T + 1, :T]                                   # (1, T)
    blk = ~(S - 1)
    row_i = lax.broadcasted_iota(jnp.int32, (T, T), 0)
    col_i = lax.broadcasted_iota(jnp.int32, (T, T), 1)
    same_batch = (row_i & blk) == (col_i & blk)
    bias = jnp.where(same_batch, jnp.broadcast_to(key_bias, (T, T)),
                     jnp.float32(-1e9))                             # (T, T)

    # Embedding LayerNorm (post-LN dropout is identity in eval mode).
    x = _layer_norm(x_ref[:T, :], vec(ROW_LNE_G, H), vec(ROW_LNE_B, H))   # (T, H)

    # All transformer layers in one basic block (static unroll over L).
    for l in range(L):
        wl = w_ref[l]                                               # (H, WCOL)
        r = _lrow(l)

        # Fused QKV projection: one (T,H) @ (H,3H) MXU push.
        qkv = (jnp.dot(x, wl[:, :3 * H], preferred_element_type=f32)
               + vec(r + R_BQKV, 3 * H))                            # (T, 3H)
        q = qkv[:, :H] * scale                 # fold 1/sqrt(dh) once per layer
        kT = qkv[:, H:2 * H].T                 # ONE XLU transpose per layer
        v = qkv[:, 2 * H:3 * H]

        # Per-head softmax(QK^T)V; head contexts are concatenated back into one
        # (T, H) tile and projected by ONE (T,H)@(H,H) dot.
        ctx_heads = []
        for n in range(NH):                                         # static unroll
            sl = slice(n * DH, (n + 1) * DH)
            s = jnp.dot(q[:, sl], kT[sl, :], preferred_element_type=f32) + bias
            m = jnp.max(s, axis=-1, keepdims=True)
            e = jnp.exp(s - m)
            p = e * pl.reciprocal(jnp.sum(e, axis=-1, keepdims=True), approx=True)
            ctx_heads.append(jnp.dot(p, v[:, sl], preferred_element_type=f32))
        ctx = jnp.concatenate(ctx_heads, axis=-1)                   # (T, H)
        attn = (jnp.dot(ctx, wl[:, 3 * H:4 * H], preferred_element_type=f32)
                + vec(r + R_BO, H))

        h1 = _layer_norm(x + attn, vec(r + R_LN1G, H), vec(r + R_LN1B, H))
        inter = _gelu(jnp.dot(h1, wl[:, 4 * H:4 * H + I],
                              preferred_element_type=f32) + vec(r + R_BI, I))
        ffn = jnp.dot(inter, w2_ref[l], preferred_element_type=f32) + vec(r + R_BO2, H)
        x = _layer_norm(h1 + ffn, vec(r + R_LN2G, H), vec(r + R_LN2B, H))

    # Fused pooler + additional_linear head, batched over B: gather the B [CLS]
    # rows into one (B, H) tile, two matmuls, ONE (B, OUT) store.
    # (dropout(p=0.1) before additional_linear is identity in eval mode.)
    cls = jnp.concatenate([x[b * S:b * S + 1, :] for b in range(B)], axis=0)   # (B, H)
    wh = w_ref[L]                                       # slab entry L: [wp | wa | 0]
    pooled = jnp.tanh(jnp.dot(cls, wh[:, :H], preferred_element_type=f32)
                      + vec(ROW_BP, H))
    out_ref[...] = (jnp.dot(pooled, wh[:, H:H + OUT], preferred_element_type=f32)
                    + vec(ROW_BA, OUT))


# --------------------------- host-side slab packing --------------------------
def pack_params(p):
    """Repack all encoder weights into 3 slabs (host-side, one-time, free)."""
    # Weight slab: per layer [wq|wk|wv|wo|wi] along lanes; entry L = [wp|wa|0].
    w_layers = jnp.concatenate([p["wq"], p["wk"], p["wv"], p["wo"], p["wi"]],
                               axis=-1)                              # (L, H, WCOL)
    head = jnp.zeros((1, H, WCOL), jnp.float32)
    head = head.at[0, :, :H].set(p["wp"])
    head = head.at[0, :, H:H + OUT].set(p["wa"])
    w_slab = jnp.concatenate([w_layers, head], axis=0)               # (L+1, H, WCOL)

    def row(v, n):
        return jnp.pad(v.reshape(1, n), ((0, 0), (0, VEC_W - n)))

    rows = [row(p["lne_g"], H), row(p["lne_b"], H)]
    for l in range(L):
        bqkv = jnp.concatenate([p["bq"][l], p["bk"][l], p["bv"][l]], axis=-1)
        rows += [row(bqkv, 3 * H), row(p["bo"][l], H),
                 row(p["ln1_g"][l], H), row(p["ln1_b"][l], H),
                 row(p["bi"][l], I), row(p["bo2"][l], H),
                 row(p["ln2_g"][l], H), row(p["ln2_b"][l], H)]
    rows += [row(p["bp"], H), row(p["ba"], OUT)]
    vec_slab = jnp.concatenate(rows, axis=0)                         # (N_VEC_ROWS, VEC_W)
    assert vec_slab.shape == (N_VEC_ROWS, VEC_W)
    return w_slab, p["wo2"], vec_slab


def encoder_forward_pallas(x_slab, w_slab, w2_slab, vec_slab):
    # Single gridless invocation: 4 whole-array VMEM blocks (~100 KB total).
    return pl.pallas_call(
        _encoder_kernel,
        out_shape=jax.ShapeDtypeStruct((B, OUT), jnp.float32),
        compiler_params=pltpu.CompilerParams(vmem_limit_bytes=32 * 1024 * 1024),
    )(x_slab, w_slab, w2_slab, vec_slab)


# ------------------------------ full forward ---------------------------------
def discription_embedding_forward(cand_input, p):
    # to_bert_input (plain-JAX glue; trivial integer ops)
    mask = (cand_input != NULL_IDX)
    token_idx = cand_input * mask.astype(cand_input.dtype)
    segment_idx = jnp.zeros_like(token_idx)

    # BERT embedding-table gathers (data-dependent gathers stay in plain JAX;
    # the embedding LayerNorm runs inside the kernel).
    emb = (p["word_emb"][token_idx]
           + p["pos_emb"][jnp.arange(S)][None, :, :]
           + p["type_emb"][segment_idx]).astype(jnp.float32)
    emb2 = emb.reshape(T, H)

    # Per-key padding bias (0 for real tokens, -10000 for padding), packed as
    # one extra row of the activation slab; the (T,T) bias is built in-kernel.
    key_bias = ((1.0 - mask.astype(jnp.float32)) * -10000.0).reshape(1, T)
    x_slab = jnp.concatenate(
        [emb2, jnp.pad(key_bias, ((0, 0), (0, H - T)))], axis=0)     # (T+1, H)

    w_slab, w2_slab, vec_slab = pack_params(p)
    return encoder_forward_pallas(x_slab, w_slab, w2_slab, vec_slab)  # (B, OUT)


# --------------------------- pure-JAX reference ------------------------------
def reference_forward(cand_input, p):
    mask = (cand_input != NULL_IDX)
    token_idx = cand_input * mask.astype(cand_input.dtype)
    segment_idx = jnp.zeros_like(token_idx)

    emb = (p["word_emb"][token_idx]
           + p["pos_emb"][jnp.arange(S)][None, :, :]
           + p["type_emb"][segment_idx]).astype(jnp.float32)
    attn_bias = ((1.0 - mask.astype(jnp.float32)) * -10000.0)[:, None, :]

    x = _layer_norm(emb, p["lne_g"], p["lne_b"])
    for l in range(L):
        q = x @ p["wq"][l] + p["bq"][l]
        k = x @ p["wk"][l] + p["bk"][l]
        v = x @ p["wv"][l] + p["bv"][l]
        ctx = []
        for h in range(NH):
            sl = slice(h * DH, (h + 1) * DH)
            s = jnp.einsum("bqd,bkd->bqk", q[..., sl], k[..., sl]) / DH ** 0.5
            pattn = jax.nn.softmax(s + attn_bias, axis=-1)
            ctx.append(jnp.einsum("bqk,bkd->bqd", pattn, v[..., sl]))
        attn = jnp.concatenate(ctx, axis=-1) @ p["wo"][l] + p["bo"][l]
        h1 = _layer_norm(x + attn, p["ln1_g"][l], p["ln1_b"][l])
        ffn = _gelu(h1 @ p["wi"][l] + p["bi"][l]) @ p["wo2"][l] + p["bo2"][l]
        x = _layer_norm(h1 + ffn, p["ln2_g"][l], p["ln2_b"][l])
    pooled = jnp.tanh(x[:, 0, :] @ p["wp"] + p["bp"])
    return pooled @ p["wa"] + p["ba"]


# ------------------------------ param init -----------------------------------
def init_params(key):
    ks = iter(jax.random.split(key, 40))
    n = lambda shape, s=0.05: (jax.random.normal(next(ks), shape, jnp.float32) * s)
    p = {
        "word_emb": n((VOCAB, H)),
        "pos_emb": n((S, H)),
        "type_emb": n((2, H)),
        "lne_g": jnp.ones((1, H), jnp.float32),
        "lne_b": jnp.zeros((1, H), jnp.float32),
        # stacked per-layer transformer params
        "wq": n((L, H, H)), "bq": jnp.zeros((L, 1, H), jnp.float32),
        "wk": n((L, H, H)), "bk": jnp.zeros((L, 1, H), jnp.float32),
        "wv": n((L, H, H)), "bv": jnp.zeros((L, 1, H), jnp.float32),
        "wo": n((L, H, H)), "bo": jnp.zeros((L, 1, H), jnp.float32),
        "ln1_g": jnp.ones((L, 1, H), jnp.float32),
        "ln1_b": jnp.zeros((L, 1, H), jnp.float32),
        "wi": n((L, H, I)), "bi": jnp.zeros((L, 1, I), jnp.float32),
        "wo2": n((L, I, H)), "bo2": jnp.zeros((L, 1, H), jnp.float32),
        "ln2_g": jnp.ones((L, 1, H), jnp.float32),
        "ln2_b": jnp.zeros((L, 1, H), jnp.float32),
        # pooler + additional_linear (add_linear=True, out_dim=OUT)
        "wp": n((H, H)), "bp": jnp.zeros((1, H), jnp.float32),
        "wa": n((H, OUT)), "ba": jnp.zeros((1, OUT), jnp.float32),
    }
    return p


# ---------------------------------- main --------------------------------------
if __name__ == "__main__":
    key = jax.random.PRNGKey(0)
    kt, kp = jax.random.split(key)
    params = init_params(kp)

    cand_input = jax.random.randint(kt, (B, S), 0, VOCAB, dtype=jnp.int32)
    # force some padding tokens so the mask path is exercised
    cand_input = cand_input.at[:, -2:].set(0)
    cand_input = cand_input.at[:, 0].set(1)   # pseudo-[CLS] (non-null)

    out = discription_embedding_forward(cand_input, params)
    out = jax.block_until_ready(out)

    ref = reference_forward(cand_input, params)
    np.testing.assert_allclose(np.asarray(out), np.asarray(ref),
                               rtol=3e-3, atol=3e-3)
    assert out.shape == (B, OUT) and out.dtype == jnp.float32
    print("KERNEL_OK")
</pallas_src>

<mosaic_0001>
module attributes {stable_mosaic.version = 11 : i64} {
  func.func @_encoder_kernel(%arg0: memref<17x32xf32, #tpu.memory_space<vmem>>, %arg1: memref<3x32x192xf32, #tpu.memory_space<vmem>>, %arg2: memref<2x64x32xf32, #tpu.memory_space<vmem>>, %arg3: memref<20x96xf32, #tpu.memory_space<vmem>>, %arg4: memref<2x16xf32, #tpu.memory_space<vmem>>) attributes {dimension_semantics = [], scalar_prefetch = 0 : i64, scratch_operands = 0 : i64, tpu.core_type = #tpu.core_type<tc>} {
    %c16 = arith.constant 16 : index
    %c0 = arith.constant 0 : index
    %0 = vector.load %arg0[%c16, %c0] : memref<17x32xf32, #tpu.memory_space<vmem>>, vector<1x16xf32>
    %1 = tpu.iota {dimensions = array<i32: 0>} : vector<16x16xi32>
    %2 = tpu.iota {dimensions = array<i32: 1>} : vector<16x16xi32>
    %c-8_i32 = arith.constant -8 : i32
    %3 = vector.broadcast %c-8_i32 : i32 to vector<16x16xi32>
    %4 = arith.andi %1, %3 : vector<16x16xi32>
    %c-8_i32_0 = arith.constant -8 : i32
    %5 = vector.broadcast %c-8_i32_0 : i32 to vector<16x16xi32>
    %6 = arith.andi %2, %5 : vector<16x16xi32>
    %7 = arith.cmpi eq, %4, %6 : vector<16x16xi32>
    %8 = vector.shape_cast %0 : vector<1x16xf32> to vector<1x16xf32>
    %9 = vector.broadcast %8 : vector<1x16xf32> to vector<16x16xf32>
    %cst = arith.constant -1.000000e+09 : f32
    %10 = vector.broadcast %cst : f32 to vector<16x16xf32>
    %11 = arith.select %7, %9, %10 : vector<16x16xi1>, vector<16x16xf32>
    %c0_1 = arith.constant 0 : index
    %c0_2 = arith.constant 0 : index
    %12 = vector.load %arg0[%c0_1, %c0_2] : memref<17x32xf32, #tpu.memory_space<vmem>>, vector<16x32xf32>
    %c0_3 = arith.constant 0 : index
    %c0_4 = arith.constant 0 : index
    %13 = vector.load %arg3[%c0_3, %c0_4] : memref<20x96xf32, #tpu.memory_space<vmem>>, vector<1x32xf32>
    %c1 = arith.constant 1 : index
    %c0_5 = arith.constant 0 : index
    %14 = vector.load %arg3[%c1, %c0_5] : memref<20x96xf32, #tpu.memory_space<vmem>>, vector<1x32xf32>
    %cst_6 = arith.constant dense<0.000000e+00> : vector<16xf32>
    %15 = vector.multi_reduction <add>, %12, %cst_6 [1] : vector<16x32xf32> to vector<16xf32>
    %16 = vector.shape_cast %15 : vector<16xf32> to vector<16x1xf32>
    %cst_7 = arith.constant 3.200000e+01 : f32
    %17 = vector.broadcast %cst_7 : f32 to vector<16x1xf32>
    %18 = arith.divf %16, %17 : vector<16x1xf32>
    %19 = vector.broadcast %18 : vector<16x1xf32> to vector<16x32xf32>
    %20 = arith.subf %12, %19 : vector<16x32xf32>
    %21 = arith.mulf %20, %20 : vector<16x32xf32>
    %cst_8 = arith.constant dense<0.000000e+00> : vector<16xf32>
    %22 = vector.multi_reduction <add>, %21, %cst_8 [1] : vector<16x32xf32> to vector<16xf32>
    %23 = vector.shape_cast %22 : vector<16xf32> to vector<16x1xf32>
    %cst_9 = arith.constant 3.200000e+01 : f32
    %24 = vector.broadcast %cst_9 : f32 to vector<16x1xf32>
    %25 = arith.divf %23, %24 : vector<16x1xf32>
    %26 = vector.broadcast %18 : vector<16x1xf32> to vector<16x32xf32>
    %27 = arith.subf %12, %26 : vector<16x32xf32>
    %cst_10 = arith.constant 9.99999996E-13 : f32
    %28 = vector.broadcast %cst_10 : f32 to vector<16x1xf32>
    %29 = arith.addf %25, %28 : vector<16x1xf32>
    %30 = math.rsqrt %29 : vector<16x1xf32>
    %31 = vector.broadcast %30 : vector<16x1xf32> to vector<16x32xf32>
    %32 = arith.mulf %27, %31 : vector<16x32xf32>
    %33 = vector.broadcast %13 : vector<1x32xf32> to vector<16x32xf32>
    %34 = arith.mulf %32, %33 : vector<16x32xf32>
    %35 = vector.broadcast %14 : vector<1x32xf32> to vector<16x32xf32>
    %36 = arith.addf %34, %35 : vector<16x32xf32>
    %c0_11 = arith.constant 0 : index
    %c0_12 = arith.constant 0 : index
    %c0_13 = arith.constant 0 : index
    %37 = vector.load %arg1[%c0_11, %c0_12, %c0_13] : memref<3x32x192xf32, #tpu.memory_space<vmem>>, vector<1x32x192xf32>
    %38 = vector.shape_cast %37 : vector<1x32x192xf32> to vector<32x192xf32>
    %39 = vector.extract_strided_slice %38 {offsets = [0, 0], sizes = [32, 96], strides = [1, 1]} : vector<32x192xf32> to vector<32x96xf32>
    %cst_14 = arith.constant dense<0.000000e+00> : vector<16x96xf32>
    %40 = tpu.matmul %36, %39, %cst_14 {dimension_numbers = #tpu.dot_dimension_numbers<[1], [0], [0], [1], [0, 0, 1, 1], [], []>} : vector<16x32xf32>, vector<32x96xf32>, vector<16x96xf32> -> vector<16x96xf32>
    %c2 = arith.constant 2 : index
    %c0_15 = arith.constant 0 : index
    %41 = vector.load %arg3[%c2, %c0_15] : memref<20x96xf32, #tpu.memory_space<vmem>>, vector<1x96xf32>
    %42 = vector.broadcast %41 : vector<1x96xf32> to vector<16x96xf32>
    %43 = arith.addf %40, %42 : vector<16x96xf32>
    %44 = vector.extract_strided_slice %43 {offsets = [0, 0], sizes = [16, 32], strides = [1, 1]} : vector<16x96xf32> to vector<16x32xf32>
    %cst_16 = arith.constant 0.353553385 : f32
    %45 = vector.broadcast %cst_16 : f32 to vector<16x32xf32>
    %46 = arith.mulf %44, %45 : vector<16x32xf32>
    %47 = vector.extract_strided_slice %43 {offsets = [0, 32], sizes = [16, 32], strides = [1, 1]} : vector<16x96xf32> to vector<16x32xf32>
    %48 = tpu.transpose %47, [1, 0] : vector<16x32xf32> -> vector<32x16xf32>
    %49 = vector.extract_strided_slice %43 {offsets = [0, 64], sizes = [16, 32], strides = [1, 1]} : vector<16x96xf32> to vector<16x32xf32>
    %50 = vector.extract_strided_slice %46 {offsets = [0, 0], sizes = [16, 8], strides = [1, 1]} : vector<16x32xf32> to vector<16x8xf32>
    %51 = vector.extract_strided_slice %48 {offsets = [0, 0], sizes = [8, 16], strides = [1, 1]} : vector<32x16xf32> to vector<8x16xf32>
    %cst_17 = arith.constant dense<0.000000e+00> : vector<16x16xf32>
    %52 = tpu.matmul %50, %51, %cst_17 {dimension_numbers = #tpu.dot_dimension_numbers<[1], [0], [0], [1], [0, 0, 1, 1], [], []>} : vector<16x8xf32>, vector<8x16xf32>, vector<16x16xf32> -> vector<16x16xf32>
    %53 = arith.addf %52, %11 : vector<16x16xf32>
    %cst_18 = arith.constant dense<0xFF800000> : vector<16xf32>
    %54 = vector.multi_reduction <maximumf>, %53, %cst_18 [1] : vector<16x16xf32> to vector<16xf32>
    %55 = vector.shape_cast %54 : vector<16xf32> to vector<16x1xf32>
    %56 = vector.broadcast %55 : vector<16x1xf32> to vector<16x16xf32>
    %57 = arith.subf %53, %56 : vector<16x16xf32>
    %58 = math.exp %57 : vector<16x16xf32>
    %cst_19 = arith.constant dense<0.000000e+00> : vector<16xf32>
    %59 = vector.multi_reduction <add>, %58, %cst_19 [1] : vector<16x16xf32> to vector<16xf32>
    %60 = vector.shape_cast %59 : vector<16xf32> to vector<16x1xf32>
    %61 = tpu.reciprocal %60 {approx = true} : vector<16x1xf32> -> vector<16x1xf32>
    %62 = vector.broadcast %61 : vector<16x1xf32> to vector<16x16xf32>
    %63 = arith.mulf %58, %62 : vector<16x16xf32>
    %64 = vector.extract_strided_slice %49 {offsets = [0, 0], sizes = [16, 8], strides = [1, 1]} : vector<16x32xf32> to vector<16x8xf32>
    %cst_20 = arith.constant dense<0.000000e+00> : vector<16x8xf32>
    %65 = tpu.matmul %63, %64, %cst_20 {dimension_numbers = #tpu.dot_dimension_numbers<[1], [0], [0], [1], [0, 0, 1, 1], [], []>} : vector<16x16xf32>, vector<16x8xf32>, vector<16x8xf32> -> vector<16x8xf32>
    %66 = vector.extract_strided_slice %46 {offsets = [0, 8], sizes = [16, 8], strides = [1, 1]} : vector<16x32xf32> to vector<16x8xf32>
    %67 = vector.extract_strided_slice %48 {offsets = [8, 0], sizes = [8, 16], strides = [1, 1]} : vector<32x16xf32> to vector<8x16xf32>
    %cst_21 = arith.constant dense<0.000000e+00> : vector<16x16xf32>
    %68 = tpu.matmul %66, %67, %cst_21 {dimension_numbers = #tpu.dot_dimension_numbers<[1], [0], [0], [1], [0, 0, 1, 1], [], []>} : vector<16x8xf32>, vector<8x16xf32>, vector<16x16xf32> -> vector<16x16xf32>
    %69 = arith.addf %68, %11 : vector<16x16xf32>
    %cst_22 = arith.constant dense<0xFF800000> : vector<16xf32>
    %70 = vector.multi_reduction <maximumf>, %69, %cst_22 [1] : vector<16x16xf32> to vector<16xf32>
    %71 = vector.shape_cast %70 : vector<16xf32> to vector<16x1xf32>
    %72 = vector.broadcast %71 : vector<16x1xf32> to vector<16x16xf32>
    %73 = arith.subf %69, %72 : vector<16x16xf32>
    %74 = math.exp %73 : vector<16x16xf32>
    %cst_23 = arith.constant dense<0.000000e+00> : vector<16xf32>
    %75 = vector.multi_reduction <add>, %74, %cst_23 [1] : vector<16x16xf32> to vector<16xf32>
    %76 = vector.shape_cast %75 : vector<16xf32> to vector<16x1xf32>
    %77 = tpu.reciprocal %76 {approx = true} : vector<16x1xf32> -> vector<16x1xf32>
    %78 = vector.broadcast %77 : vector<16x1xf32> to vector<16x16xf32>
    %79 = arith.mulf %74, %78 : vector<16x16xf32>
    %80 = vector.extract_strided_slice %49 {offsets = [0, 8], sizes = [16, 8], strides = [1, 1]} : vector<16x32xf32> to vector<16x8xf32>
    %cst_24 = arith.constant dense<0.000000e+00> : vector<16x8xf32>
    %81 = tpu.matmul %79, %80, %cst_24 {dimension_numbers = #tpu.dot_dimension_numbers<[1], [0], [0], [1], [0, 0, 1, 1], [], []>} : vector<16x16xf32>, vector<16x8xf32>, vector<16x8xf32> -> vector<16x8xf32>
    %82 = vector.extract_strided_slice %46 {offsets = [0, 16], sizes = [16, 8], strides = [1, 1]} : vector<16x32xf32> to vector<16x8xf32>
    %83 = vector.extract_strided_slice %48 {offsets = [16, 0], sizes = [8, 16], strides = [1, 1]} : vector<32x16xf32> to vector<8x16xf32>
    %cst_25 = arith.constant dense<0.000000e+00> : vector<16x16xf32>
    %84 = tpu.matmul %82, %83, %cst_25 {dimension_numbers = #tpu.dot_dimension_numbers<[1], [0], [0], [1], [0, 0, 1, 1], [], []>} : vector<16x8xf32>, vector<8x16xf32>, vector<16x16xf32> -> vector<16x16xf32>
    %85 = arith.addf %84, %11 : vector<16x16xf32>
    %cst_26 = arith.constant dense<0xFF800000> : vector<16xf32>
    %86 = vector.multi_reduction <maximumf>, %85, %cst_26 [1] : vector<16x16xf32> to vector<16xf32>
    %87 = vector.shape_cast %86 : vector<16xf32> to vector<16x1xf32>
    %88 = vector.broadcast %87 : vector<16x1xf32> to vector<16x16xf32>
    %89 = arith.subf %85, %88 : vector<16x16xf32>
    %90 = math.exp %89 : vector<16x16xf32>
    %cst_27 = arith.constant dense<0.000000e+00> : vector<16xf32>
    %91 = vector.multi_reduction <add>, %90, %cst_27 [1] : vector<16x16xf32> to vector<16xf32>
    %92 = vector.shape_cast %91 : vector<16xf32> to vector<16x1xf32>
    %93 = tpu.reciprocal %92 {approx = true} : vector<16x1xf32> -> vector<16x1xf32>
    %94 = vector.broadcast %93 : vector<16x1xf32> to vector<16x16xf32>
    %95 = arith.mulf %90, %94 : vector<16x16xf32>
    %96 = vector.extract_strided_slice %49 {offsets = [0, 16], sizes = [16, 8], strides = [1, 1]} : vector<16x32xf32> to vector<16x8xf32>
    %cst_28 = arith.constant dense<0.000000e+00> : vector<16x8xf32>
    %97 = tpu.matmul %95, %96, %cst_28 {dimension_numbers = #tpu.dot_dimension_numbers<[1], [0], [0], [1], [0, 0, 1, 1], [], []>} : vector<16x16xf32>, vector<16x8xf32>, vector<16x8xf32> -> vector<16x8xf32>
    %98 = vector.extract_strided_slice %46 {offsets = [0, 24], sizes = [16, 8], strides = [1, 1]} : vector<16x32xf32> to vector<16x8xf32>
    %99 = vector.extract_strided_slice %48 {offsets = [24, 0], sizes = [8, 16], strides = [1, 1]} : vector<32x16xf32> to vector<8x16xf32>
    %cst_29 = arith.constant dense<0.000000e+00> : vector<16x16xf32>
    %100 = tpu.matmul %98, %99, %cst_29 {dimension_numbers = #tpu.dot_dimension_numbers<[1], [0], [0], [1], [0, 0, 1, 1], [], []>} : vector<16x8xf32>, vector<8x16xf32>, vector<16x16xf32> -> vector<16x16xf32>
    %101 = arith.addf %100, %11 : vector<16x16xf32>
    %cst_30 = arith.constant dense<0xFF800000> : vector<16xf32>
    %102 = vector.multi_reduction <maximumf>, %101, %cst_30 [1] : vector<16x16xf32> to vector<16xf32>
    %103 = vector.shape_cast %102 : vector<16xf32> to vector<16x1xf32>
    %104 = vector.broadcast %103 : vector<16x1xf32> to vector<16x16xf32>
    %105 = arith.subf %101, %104 : vector<16x16xf32>
    %106 = math.exp %105 : vector<16x16xf32>
    %cst_31 = arith.constant dense<0.000000e+00> : vector<16xf32>
    %107 = vector.multi_reduction <add>, %106, %cst_31 [1] : vector<16x16xf32> to vector<16xf32>
    %108 = vector.shape_cast %107 : vector<16xf32> to vector<16x1xf32>
    %109 = tpu.reciprocal %108 {approx = true} : vector<16x1xf32> -> vector<16x1xf32>
    %110 = vector.broadcast %109 : vector<16x1xf32> to vector<16x16xf32>
    %111 = arith.mulf %106, %110 : vector<16x16xf32>
    %112 = vector.extract_strided_slice %49 {offsets = [0, 24], sizes = [16, 8], strides = [1, 1]} : vector<16x32xf32> to vector<16x8xf32>
    %cst_32 = arith.constant dense<0.000000e+00> : vector<16x8xf32>
    %113 = tpu.matmul %111, %112, %cst_32 {dimension_numbers = #tpu.dot_dimension_numbers<[1], [0], [0], [1], [0, 0, 1, 1], [], []>} : vector<16x16xf32>, vector<16x8xf32>, vector<16x8xf32> -> vector<16x8xf32>
    %114 = tpu.concatenate %65, %81, %97, %113 in 1 : vector<16x8xf32>, vector<16x8xf32>, vector<16x8xf32>, vector<16x8xf32> -> vector<16x32xf32>
    %115 = vector.extract_strided_slice %38 {offsets = [0, 96], sizes = [32, 32], strides = [1, 1]} : vector<32x192xf32> to vector<32x32xf32>
    %cst_33 = arith.constant dense<0.000000e+00> : vector<16x32xf32>
    %116 = tpu.matmul %114, %115, %cst_33 {dimension_numbers = #tpu.dot_dimension_numbers<[1], [0], [0], [1], [0, 0, 1, 1], [], []>} : vector<16x32xf32>, vector<32x32xf32>, vector<16x32xf32> -> vector<16x32xf32>
    %c3 = arith.constant 3 : index
    %c0_34 = arith.constant 0 : index
    %117 = vector.load %arg3[%c3, %c0_34] : memref<20x96xf32, #tpu.memory_space<vmem>>, vector<1x32xf32>
    %118 = vector.broadcast %117 : vector<1x32xf32> to vector<16x32xf32>
    %119 = arith.addf %116, %118 : vector<16x32xf32>
    %120 = arith.addf %36, %119 : vector<16x32xf32>
    %c4 = arith.constant 4 : index
    %c0_35 = arith.constant 0 : index
    %121 = vector.load %arg3[%c4, %c0_35] : memref<20x96xf32, #tpu.memory_space<vmem>>, vector<1x32xf32>
    %c5 = arith.constant 5 : index
    %c0_36 = arith.constant 0 : index
    %122 = vector.load %arg3[%c5, %c0_36] : memref<20x96xf32, #tpu.memory_space<vmem>>, vector<1x32xf32>
    %cst_37 = arith.constant dense<0.000000e+00> : vector<16xf32>
    %123 = vector.multi_reduction <add>, %120, %cst_37 [1] : vector<16x32xf32> to vector<16xf32>
    %124 = vector.shape_cast %123 : vector<16xf32> to vector<16x1xf32>
    %cst_38 = arith.constant 3.200000e+01 : f32
    %125 = vector.broadcast %cst_38 : f32 to vector<16x1xf32>
    %126 = arith.divf %124, %125 : vector<16x1xf32>
    %127 = vector.broadcast %126 : vector<16x1xf32> to vector<16x32xf32>
    %128 = arith.subf %120, %127 : vector<16x32xf32>
    %129 = arith.mulf %128, %128 : vector<16x32xf32>
    %cst_39 = arith.constant dense<0.000000e+00> : vector<16xf32>
    %130 = vector.multi_reduction <add>, %129, %cst_39 [1] : vector<16x32xf32> to vector<16xf32>
    %131 = vector.shape_cast %130 : vector<16xf32> to vector<16x1xf32>
    %cst_40 = arith.constant 3.200000e+01 : f32
    %132 = vector.broadcast %cst_40 : f32 to vector<16x1xf32>
    %133 = arith.divf %131, %132 : vector<16x1xf32>
    %134 = vector.broadcast %126 : vector<16x1xf32> to vector<16x32xf32>
    %135 = arith.subf %120, %134 : vector<16x32xf32>
    %cst_41 = arith.constant 9.99999996E-13 : f32
    %136 = vector.broadcast %cst_41 : f32 to vector<16x1xf32>
    %137 = arith.addf %133, %136 : vector<16x1xf32>
    %138 = math.rsqrt %137 : vector<16x1xf32>
    %139 = vector.broadcast %138 : vector<16x1xf32> to vector<16x32xf32>
    %140 = arith.mulf %135, %139 : vector<16x32xf32>
    %141 = vector.broadcast %121 : vector<1x32xf32> to vector<16x32xf32>
    %142 = arith.mulf %140, %141 : vector<16x32xf32>
    %143 = vector.broadcast %122 : vector<1x32xf32> to vector<16x32xf32>
    %144 = arith.addf %142, %143 : vector<16x32xf32>
    %145 = vector.extract_strided_slice %38 {offsets = [0, 128], sizes = [32, 64], strides = [1, 1]} : vector<32x192xf32> to vector<32x64xf32>
    %cst_42 = arith.constant dense<0.000000e+00> : vector<16x64xf32>
    %146 = tpu.matmul %144, %145, %cst_42 {dimension_numbers = #tpu.dot_dimension_numbers<[1], [0], [0], [1], [0, 0, 1, 1], [], []>} : vector<16x32xf32>, vector<32x64xf32>, vector<16x64xf32> -> vector<16x64xf32>
    %c6 = arith.constant 6 : index
    %c0_43 = arith.constant 0 : index
    %147 = vector.load %arg3[%c6, %c0_43] : memref<20x96xf32, #tpu.memory_space<vmem>>, vector<1x64xf32>
    %148 = vector.broadcast %147 : vector<1x64xf32> to vector<16x64xf32>
    %149 = arith.addf %146, %148 : vector<16x64xf32>
    %cst_44 = arith.constant 5.000000e-01 : f32
    %150 = vector.broadcast %cst_44 : f32 to vector<16x64xf32>
    %151 = arith.mulf %150, %149 : vector<16x64xf32>
    %cst_45 = arith.constant 4.471500e-02 : f32
    %152 = vector.broadcast %cst_45 : f32 to vector<16x64xf32>
    %153 = arith.mulf %152, %149 : vector<16x64xf32>
    %154 = arith.mulf %153, %149 : vector<16x64xf32>
    %155 = arith.mulf %154, %149 : vector<16x64xf32>
    %156 = arith.addf %149, %155 : vector<16x64xf32>
    %cst_46 = arith.constant 0.797884583 : f32
    %157 = vector.broadcast %cst_46 : f32 to vector<16x64xf32>
    %158 = arith.mulf %157, %156 : vector<16x64xf32>
    %159 = math.tanh %158 : vector<16x64xf32>
    %cst_47 = arith.constant 1.000000e+00 : f32
    %160 = vector.broadcast %cst_47 : f32 to vector<16x64xf32>
    %161 = arith.addf %160, %159 : vector<16x64xf32>
    %162 = arith.mulf %151, %161 : vector<16x64xf32>
    %c0_48 = arith.constant 0 : index
    %c0_49 = arith.constant 0 : index
    %c0_50 = arith.constant 0 : index
    %163 = vector.load %arg2[%c0_48, %c0_49, %c0_50] : memref<2x64x32xf32, #tpu.memory_space<vmem>>, vector<1x64x32xf32>
    %164 = vector.shape_cast %163 : vector<1x64x32xf32> to vector<64x32xf32>
    %cst_51 = arith.constant dense<0.000000e+00> : vector<16x32xf32>
    %165 = tpu.matmul %162, %164, %cst_51 {dimension_numbers = #tpu.dot_dimension_numbers<[1], [0], [0], [1], [0, 0, 1, 1], [], []>} : vector<16x64xf32>, vector<64x32xf32>, vector<16x32xf32> -> vector<16x32xf32>
    %c7 = arith.constant 7 : index
    %c0_52 = arith.constant 0 : index
    %166 = vector.load %arg3[%c7, %c0_52] : memref<20x96xf32, #tpu.memory_space<vmem>>, vector<1x32xf32>
    %167 = vector.broadcast %166 : vector<1x32xf32> to vector<16x32xf32>
    %168 = arith.addf %165, %167 : vector<16x32xf32>
    %169 = arith.addf %144, %168 : vector<16x32xf32>
    %c8 = arith.constant 8 : index
    %c0_53 = arith.constant 0 : index
    %170 = vector.load %arg3[%c8, %c0_53] : memref<20x96xf32, #tpu.memory_space<vmem>>, vector<1x32xf32>
    %c9 = arith.constant 9 : index
    %c0_54 = arith.constant 0 : index
    %171 = vector.load %arg3[%c9, %c0_54] : memref<20x96xf32, #tpu.memory_space<vmem>>, vector<1x32xf32>
    %cst_55 = arith.constant dense<0.000000e+00> : vector<16xf32>
    %172 = vector.multi_reduction <add>, %169, %cst_55 [1] : vector<16x32xf32> to vector<16xf32>
    %173 = vector.shape_cast %172 : vector<16xf32> to vector<16x1xf32>
    %cst_56 = arith.constant 3.200000e+01 : f32
    %174 = vector.broadcast %cst_56 : f32 to vector<16x1xf32>
    %175 = arith.divf %173, %174 : vector<16x1xf32>
    %176 = vector.broadcast %175 : vector<16x1xf32> to vector<16x32xf32>
    %177 = arith.subf %169, %176 : vector<16x32xf32>
    %178 = arith.mulf %177, %177 : vector<16x32xf32>
    %cst_57 = arith.constant dense<0.000000e+00> : vector<16xf32>
    %179 = vector.multi_reduction <add>, %178, %cst_57 [1] : vector<16x32xf32> to vector<16xf32>
    %180 = vector.shape_cast %179 : vector<16xf32> to vector<16x1xf32>
    %cst_58 = arith.constant 3.200000e+01 : f32
    %181 = vector.broadcast %cst_58 : f32 to vector<16x1xf32>
    %182 = arith.divf %180, %181 : vector<16x1xf32>
    %183 = vector.broadcast %175 : vector<16x1xf32> to vector<16x32xf32>
    %184 = arith.subf %169, %183 : vector<16x32xf32>
    %cst_59 = arith.constant 9.99999996E-13 : f32
    %185 = vector.broadcast %cst_59 : f32 to vector<16x1xf32>
    %186 = arith.addf %182, %185 : vector<16x1xf32>
    %187 = math.rsqrt %186 : vector<16x1xf32>
    %188 = vector.broadcast %187 : vector<16x1xf32> to vector<16x32xf32>
    %189 = arith.mulf %184, %188 : vector<16x32xf32>
    %190 = vector.broadcast %170 : vector<1x32xf32> to vector<16x32xf32>
    %191 = arith.mulf %189, %190 : vector<16x32xf32>
    %192 = vector.broadcast %171 : vector<1x32xf32> to vector<16x32xf32>
    %193 = arith.addf %191, %192 : vector<16x32xf32>
    %c1_60 = arith.constant 1 : index
    %c0_61 = arith.constant 0 : index
    %c0_62 = arith.constant 0 : index
    %194 = vector.load %arg1[%c1_60, %c0_61, %c0_62] : memref<3x32x192xf32, #tpu.memory_space<vmem>>, vector<1x32x192xf32>
    %195 = vector.shape_cast %194 : vector<1x32x192xf32> to vector<32x192xf32>
    %196 = vector.extract_strided_slice %195 {offsets = [0, 0], sizes = [32, 96], strides = [1, 1]} : vector<32x192xf32> to vector<32x96xf32>
    %cst_63 = arith.constant dense<0.000000e+00> : vector<16x96xf32>
    %197 = tpu.matmul %193, %196, %cst_63 {dimension_numbers = #tpu.dot_dimension_numbers<[1], [0], [0], [1], [0, 0, 1, 1], [], []>} : vector<16x32xf32>, vector<32x96xf32>, vector<16x96xf32> -> vector<16x96xf32>
    %c10 = arith.constant 10 : index
    %c0_64 = arith.constant 0 : index
    %198 = vector.load %arg3[%c10, %c0_64] : memref<20x96xf32, #tpu.memory_space<vmem>>, vector<1x96xf32>
    %199 = vector.broadcast %198 : vector<1x96xf32> to vector<16x96xf32>
    %200 = arith.addf %197, %199 : vector<16x96xf32>
    %201 = vector.extract_strided_slice %200 {offsets = [0, 0], sizes = [16, 32], strides = [1, 1]} : vector<16x96xf32> to vector<16x32xf32>
    %cst_65 = arith.constant 0.353553385 : f32
    %202 = vector.broadcast %cst_65 : f32 to vector<16x32xf32>
    %203 = arith.mulf %201, %202 : vector<16x32xf32>
    %204 = vector.extract_strided_slice %200 {offsets = [0, 32], sizes = [16, 32], strides = [1, 1]} : vector<16x96xf32> to vector<16x32xf32>
    %205 = tpu.transpose %204, [1, 0] : vector<16x32xf32> -> vector<32x16xf32>
    %206 = vector.extract_strided_slice %200 {offsets = [0, 64], sizes = [16, 32], strides = [1, 1]} : vector<16x96xf32> to vector<16x32xf32>
    %207 = vector.extract_strided_slice %203 {offsets = [0, 0], sizes = [16, 8], strides = [1, 1]} : vector<16x32xf32> to vector<16x8xf32>
    %208 = vector.extract_strided_slice %205 {offsets = [0, 0], sizes = [8, 16], strides = [1, 1]} : vector<32x16xf32> to vector<8x16xf32>
    %cst_66 = arith.constant dense<0.000000e+00> : vector<16x16xf32>
    %209 = tpu.matmul %207, %208, %cst_66 {dimension_numbers = #tpu.dot_dimension_numbers<[1], [0], [0], [1], [0, 0, 1, 1], [], []>} : vector<16x8xf32>, vector<8x16xf32>, vector<16x16xf32> -> vector<16x16xf32>
    %210 = arith.addf %209, %11 : vector<16x16xf32>
    %cst_67 = arith.constant dense<0xFF800000> : vector<16xf32>
    %211 = vector.multi_reduction <maximumf>, %210, %cst_67 [1] : vector<16x16xf32> to vector<16xf32>
    %212 = vector.shape_cast %211 : vector<16xf32> to vector<16x1xf32>
    %213 = vector.broadcast %212 : vector<16x1xf32> to vector<16x16xf32>
    %214 = arith.subf %210, %213 : vector<16x16xf32>
    %215 = math.exp %214 : vector<16x16xf32>
    %cst_68 = arith.constant dense<0.000000e+00> : vector<16xf32>
    %216 = vector.multi_reduction <add>, %215, %cst_68 [1] : vector<16x16xf32> to vector<16xf32>
    %217 = vector.shape_cast %216 : vector<16xf32> to vector<16x1xf32>
    %218 = tpu.reciprocal %217 {approx = true} : vector<16x1xf32> -> vector<16x1xf32>
    %219 = vector.broadcast %218 : vector<16x1xf32> to vector<16x16xf32>
    %220 = arith.mulf %215, %219 : vector<16x16xf32>
    %221 = vector.extract_strided_slice %206 {offsets = [0, 0], sizes = [16, 8], strides = [1, 1]} : vector<16x32xf32> to vector<16x8xf32>
    %cst_69 = arith.constant dense<0.000000e+00> : vector<16x8xf32>
    %222 = tpu.matmul %220, %221, %cst_69 {dimension_numbers = #tpu.dot_dimension_numbers<[1], [0], [0], [1], [0, 0, 1, 1], [], []>} : vector<16x16xf32>, vector<16x8xf32>, vector<16x8xf32> -> vector<16x8xf32>
    %223 = vector.extract_strided_slice %203 {offsets = [0, 8], sizes = [16, 8], strides = [1, 1]} : vector<16x32xf32> to vector<16x8xf32>
    %224 = vector.extract_strided_slice %205 {offsets = [8, 0], sizes = [8, 16], strides = [1, 1]} : vector<32x16xf32> to vector<8x16xf32>
    %cst_70 = arith.constant dense<0.000000e+00> : vector<16x16xf32>
    %225 = tpu.matmul %223, %224, %cst_70 {dimension_numbers = #tpu.dot_dimension_numbers<[1], [0], [0], [1], [0, 0, 1, 1], [], []>} : vector<16x8xf32>, vector<8x16xf32>, vector<16x16xf32> -> vector<16x16xf32>
    %226 = arith.addf %225, %11 : vector<16x16xf32>
    %cst_71 = arith.constant dense<0xFF800000> : vector<16xf32>
    %227 = vector.multi_reduction <maximumf>, %226, %cst_71 [1] : vector<16x16xf32> to vector<16xf32>
    %228 = vector.shape_cast %227 : vector<16xf32> to vector<16x1xf32>
    %229 = vector.broadcast %228 : vector<16x1xf32> to vector<16x16xf32>
    %230 = arith.subf %226, %229 : vector<16x16xf32>
    %231 = math.exp %230 : vector<16x16xf32>
    %cst_72 = arith.constant dense<0.000000e+00> : vector<16xf32>
    %232 = vector.multi_reduction <add>, %231, %cst_72 [1] : vector<16x16xf32> to vector<16xf32>
    %233 = vector.shape_cast %232 : vector<16xf32> to vector<16x1xf32>
    %234 = tpu.reciprocal %233 {approx = true} : vector<16x1xf32> -> vector<16x1xf32>
    %235 = vector.broadcast %234 : vector<16x1xf32> to vector<16x16xf32>
    %236 = arith.mulf %231, %235 : vector<16x16xf32>
    %237 = vector.extract_strided_slice %206 {offsets = [0, 8], sizes = [16, 8], strides = [1, 1]} : vector<16x32xf32> to vector<16x8xf32>
    %cst_73 = arith.constant dense<0.000000e+00> : vector<16x8xf32>
    %238 = tpu.matmul %236, %237, %cst_73 {dimension_numbers = #tpu.dot_dimension_numbers<[1], [0], [0], [1], [0, 0, 1, 1], [], []>} : vector<16x16xf32>, vector<16x8xf32>, vector<16x8xf32> -> vector<16x8xf32>
    %239 = vector.extract_strided_slice %203 {offsets = [0, 16], sizes = [16, 8], strides = [1, 1]} : vector<16x32xf32> to vector<16x8xf32>
    %240 = vector.extract_strided_slice %205 {offsets = [16, 0], sizes = [8, 16], strides = [1, 1]} : vector<32x16xf32> to vector<8x16xf32>
    %cst_74 = arith.constant dense<0.000000e+00> : vector<16x16xf32>
    %241 = tpu.matmul %239, %240, %cst_74 {dimension_numbers = #tpu.dot_dimension_numbers<[1], [0], [0], [1], [0, 0, 1, 1], [], []>} : vector<16x8xf32>, vector<8x16xf32>, vector<16x16xf32> -> vector<16x16xf32>
    %242 = arith.addf %241, %11 : vector<16x16xf32>
    %cst_75 = arith.constant dense<0xFF800000> : vector<16xf32>
    %243 = vector.multi_reduction <maximumf>, %242, %cst_75 [1] : vector<16x16xf32> to vector<16xf32>
    %244 = vector.shape_cast %243 : vector<16xf32> to vector<16x1xf32>
    %245 = vector.broadcast %244 : vector<16x1xf32> to vector<16x16xf32>
    %246 = arith.subf %242, %245 : vector<16x16xf32>
    %247 = math.exp %246 : vector<16x16xf32>
    %cst_76 = arith.constant dense<0.000000e+00> : vector<16xf32>
    %248 = vector.multi_reduction <add>, %247, %cst_76 [1] : vector<16x16xf32> to vector<16xf32>
    %249 = vector.shape_cast %248 : vector<16xf32> to vector<16x1xf32>
    %250 = tpu.reciprocal %249 {approx = true} : vector<16x1xf32> -> vector<16x1xf32>
    %251 = vector.broadcast %250 : vector<16x1xf32> to vector<16x16xf32>
    %252 = arith.mulf %247, %251 : vector<16x16xf32>
    %253 = vector.extract_strided_slice %206 {offsets = [0, 16], sizes = [16, 8], strides = [1, 1]} : vector<16x32xf32> to vector<16x8xf32>
    %cst_77 = arith.constant dense<0.000000e+00> : vector<16x8xf32>
    %254 = tpu.matmul %252, %253, %cst_77 {dimension_numbers = #tpu.dot_dimension_numbers<[1], [0], [0], [1], [0, 0, 1, 1], [], []>} : vector<16x16xf32>, vector<16x8xf32>, vector<16x8xf32> -> vector<16x8xf32>
    %255 = vector.extract_strided_slice %203 {offsets = [0, 24], sizes = [16, 8], strides = [1, 1]} : vector<16x32xf32> to vector<16x8xf32>
    %256 = vector.extract_strided_slice %205 {offsets = [24, 0], sizes = [8, 16], strides = [1, 1]} : vector<32x16xf32> to vector<8x16xf32>
    %cst_78 = arith.constant dense<0.000000e+00> : vector<16x16xf32>
    %257 = tpu.matmul %255, %256, %cst_78 {dimension_numbers = #tpu.dot_dimension_numbers<[1], [0], [0], [1], [0, 0, 1, 1], [], []>} : vector<16x8xf32>, vector<8x16xf32>, vector<16x16xf32> -> vector<16x16xf32>
    %258 = arith.addf %257, %11 : vector<16x16xf32>
    %cst_79 = arith.constant dense<0xFF800000> : vector<16xf32>
    %259 = vector.multi_reduction <maximumf>, %258, %cst_79 [1] : vector<16x16xf32> to vector<16xf32>
    %260 = vector.shape_cast %259 : vector<16xf32> to vector<16x1xf32>
    %261 = vector.broadcast %260 : vector<16x1xf32> to vector<16x16xf32>
    %262 = arith.subf %258, %261 : vector<16x16xf32>
    %263 = math.exp %262 : vector<16x16xf32>
    %cst_80 = arith.constant dense<0.000000e+00> : vector<16xf32>
    %264 = vector.multi_reduction <add>, %263, %cst_80 [1] : vector<16x16xf32> to vector<16xf32>
    %265 = vector.shape_cast %264 : vector<16xf32> to vector<16x1xf32>
    %266 = tpu.reciprocal %265 {approx = true} : vector<16x1xf32> -> vector<16x1xf32>
    %267 = vector.broadcast %266 : vector<16x1xf32> to vector<16x16xf32>
    %268 = arith.mulf %263, %267 : vector<16x16xf32>
    %269 = vector.extract_strided_slice %206 {offsets = [0, 24], sizes = [16, 8], strides = [1, 1]} : vector<16x32xf32> to vector<16x8xf32>
    %cst_81 = arith.constant dense<0.000000e+00> : vector<16x8xf32>
    %270 = tpu.matmul %268, %269, %cst_81 {dimension_numbers = #tpu.dot_dimension_numbers<[1], [0], [0], [1], [0, 0, 1, 1], [], []>} : vector<16x16xf32>, vector<16x8xf32>, vector<16x8xf32> -> vector<16x8xf32>
    %271 = tpu.concatenate %222, %238, %254, %270 in 1 : vector<16x8xf32>, vector<16x8xf32>, vector<16x8xf32>, vector<16x8xf32> -> vector<16x32xf32>
    %272 = vector.extract_strided_slice %195 {offsets = [0, 96], sizes = [32, 32], strides = [1, 1]} : vector<32x192xf32> to vector<32x32xf32>
    %cst_82 = arith.constant dense<0.000000e+00> : vector<16x32xf32>
    %273 = tpu.matmul %271, %272, %cst_82 {dimension_numbers = #tpu.dot_dimension_numbers<[1], [0], [0], [1], [0, 0, 1, 1], [], []>} : vector<16x32xf32>, vector<32x32xf32>, vector<16x32xf32> -> vector<16x32xf32>
    %c11 = arith.constant 11 : index
    %c0_83 = arith.constant 0 : index
    %274 = vector.load %arg3[%c11, %c0_83] : memref<20x96xf32, #tpu.memory_space<vmem>>, vector<1x32xf32>
    %275 = vector.broadcast %274 : vector<1x32xf32> to vector<16x32xf32>
    %276 = arith.addf %273, %275 : vector<16x32xf32>
    %277 = arith.addf %193, %276 : vector<16x32xf32>
    %c12 = arith.constant 12 : index
    %c0_84 = arith.constant 0 : index
    %278 = vector.load %arg3[%c12, %c0_84] : memref<20x96xf32, #tpu.memory_space<vmem>>, vector<1x32xf32>
    %c13 = arith.constant 13 : index
    %c0_85 = arith.constant 0 : index
    %279 = vector.load %arg3[%c13, %c0_85] : memref<20x96xf32, #tpu.memory_space<vmem>>, vector<1x32xf32>
    %cst_86 = arith.constant dense<0.000000e+00> : vector<16xf32>
    %280 = vector.multi_reduction <add>, %277, %cst_86 [1] : vector<16x32xf32> to vector<16xf32>
    %281 = vector.shape_cast %280 : vector<16xf32> to vector<16x1xf32>
    %cst_87 = arith.constant 3.200000e+01 : f32
    %282 = vector.broadcast %cst_87 : f32 to vector<16x1xf32>
    %283 = arith.divf %281, %282 : vector<16x1xf32>
    %284 = vector.broadcast %283 : vector<16x1xf32> to vector<16x32xf32>
    %285 = arith.subf %277, %284 : vector<16x32xf32>
    %286 = arith.mulf %285, %285 : vector<16x32xf32>
    %cst_88 = arith.constant dense<0.000000e+00> : vector<16xf32>
    %287 = vector.multi_reduction <add>, %286, %cst_88 [1] : vector<16x32xf32> to vector<16xf32>
    %288 = vector.shape_cast %287 : vector<16xf32> to vector<16x1xf32>
    %cst_89 = arith.constant 3.200000e+01 : f32
    %289 = vector.broadcast %cst_89 : f32 to vector<16x1xf32>
    %290 = arith.divf %288, %289 : vector<16x1xf32>
    %291 = vector.broadcast %283 : vector<16x1xf32> to vector<16x32xf32>
    %292 = arith.subf %277, %291 : vector<16x32xf32>
    %cst_90 = arith.constant 9.99999996E-13 : f32
    %293 = vector.broadcast %cst_90 : f32 to vector<16x1xf32>
    %294 = arith.addf %290, %293 : vector<16x1xf32>
    %295 = math.rsqrt %294 : vector<16x1xf32>
    %296 = vector.broadcast %295 : vector<16x1xf32> to vector<16x32xf32>
    %297 = arith.mulf %292, %296 : vector<16x32xf32>
    %298 = vector.broadcast %278 : vector<1x32xf32> to vector<16x32xf32>
    %299 = arith.mulf %297, %298 : vector<16x32xf32>
    %300 = vector.broadcast %279 : vector<1x32xf32> to vector<16x32xf32>
    %301 = arith.addf %299, %300 : vector<16x32xf32>
    %302 = vector.extract_strided_slice %195 {offsets = [0, 128], sizes = [32, 64], strides = [1, 1]} : vector<32x192xf32> to vector<32x64xf32>
    %cst_91 = arith.constant dense<0.000000e+00> : vector<16x64xf32>
    %303 = tpu.matmul %301, %302, %cst_91 {dimension_numbers = #tpu.dot_dimension_numbers<[1], [0], [0], [1], [0, 0, 1, 1], [], []>} : vector<16x32xf32>, vector<32x64xf32>, vector<16x64xf32> -> vector<16x64xf32>
    %c14 = arith.constant 14 : index
    %c0_92 = arith.constant 0 : index
    %304 = vector.load %arg3[%c14, %c0_92] : memref<20x96xf32, #tpu.memory_space<vmem>>, vector<1x64xf32>
    %305 = vector.broadcast %304 : vector<1x64xf32> to vector<16x64xf32>
    %306 = arith.addf %303, %305 : vector<16x64xf32>
    %cst_93 = arith.constant 5.000000e-01 : f32
    %307 = vector.broadcast %cst_93 : f32 to vector<16x64xf32>
    %308 = arith.mulf %307, %306 : vector<16x64xf32>
    %cst_94 = arith.constant 4.471500e-02 : f32
    %309 = vector.broadcast %cst_94 : f32 to vector<16x64xf32>
    %310 = arith.mulf %309, %306 : vector<16x64xf32>
    %311 = arith.mulf %310, %306 : vector<16x64xf32>
    %312 = arith.mulf %311, %306 : vector<16x64xf32>
    %313 = arith.addf %306, %312 : vector<16x64xf32>
    %cst_95 = arith.constant 0.797884583 : f32
    %314 = vector.broadcast %cst_95 : f32 to vector<16x64xf32>
    %315 = arith.mulf %314, %313 : vector<16x64xf32>
    %316 = math.tanh %315 : vector<16x64xf32>
    %cst_96 = arith.constant 1.000000e+00 : f32
    %317 = vector.broadcast %cst_96 : f32 to vector<16x64xf32>
    %318 = arith.addf %317, %316 : vector<16x64xf32>
    %319 = arith.mulf %308, %318 : vector<16x64xf32>
    %c1_97 = arith.constant 1 : index
    %c0_98 = arith.constant 0 : index
    %c0_99 = arith.constant 0 : index
    %320 = vector.load %arg2[%c1_97, %c0_98, %c0_99] : memref<2x64x32xf32, #tpu.memory_space<vmem>>, vector<1x64x32xf32>
    %321 = vector.shape_cast %320 : vector<1x64x32xf32> to vector<64x32xf32>
    %cst_100 = arith.constant dense<0.000000e+00> : vector<16x32xf32>
    %322 = tpu.matmul %319, %321, %cst_100 {dimension_numbers = #tpu.dot_dimension_numbers<[1], [0], [0], [1], [0, 0, 1, 1], [], []>} : vector<16x64xf32>, vector<64x32xf32>, vector<16x32xf32> -> vector<16x32xf32>
    %c15 = arith.constant 15 : index
    %c0_101 = arith.constant 0 : index
    %323 = vector.load %arg3[%c15, %c0_101] : memref<20x96xf32, #tpu.memory_space<vmem>>, vector<1x32xf32>
    %324 = vector.broadcast %323 : vector<1x32xf32> to vector<16x32xf32>
    %325 = arith.addf %322, %324 : vector<16x32xf32>
    %326 = arith.addf %301, %325 : vector<16x32xf32>
    %c16_102 = arith.constant 16 : index
    %c0_103 = arith.constant 0 : index
    %327 = vector.load %arg3[%c16_102, %c0_103] : memref<20x96xf32, #tpu.memory_space<vmem>>, vector<1x32xf32>
    %c17 = arith.constant 17 : index
    %c0_104 = arith.constant 0 : index
    %328 = vector.load %arg3[%c17, %c0_104] : memref<20x96xf32, #tpu.memory_space<vmem>>, vector<1x32xf32>
    %cst_105 = arith.constant dense<0.000000e+00> : vector<16xf32>
    %329 = vector.multi_reduction <add>, %326, %cst_105 [1] : vector<16x32xf32> to vector<16xf32>
    %330 = vector.shape_cast %329 : vector<16xf32> to vector<16x1xf32>
    %cst_106 = arith.constant 3.200000e+01 : f32
    %331 = vector.broadcast %cst_106 : f32 to vector<16x1xf32>
    %332 = arith.divf %330, %331 : vector<16x1xf32>
    %333 = vector.broadcast %332 : vector<16x1xf32> to vector<16x32xf32>
    %334 = arith.subf %326, %333 : vector<16x32xf32>
    %335 = arith.mulf %334, %334 : vector<16x32xf32>
    %cst_107 = arith.constant dense<0.000000e+00> : vector<16xf32>
    %336 = vector.multi_reduction <add>, %335, %cst_107 [1] : vector<16x32xf32> to vector<16xf32>
    %337 = vector.shape_cast %336 : vector<16xf32> to vector<16x1xf32>
    %cst_108 = arith.constant 3.200000e+01 : f32
    %338 = vector.broadcast %cst_108 : f32 to vector<16x1xf32>
    %339 = arith.divf %337, %338 : vector<16x1xf32>
    %340 = vector.broadcast %332 : vector<16x1xf32> to vector<16x32xf32>
    %341 = arith.subf %326, %340 : vector<16x32xf32>
    %cst_109 = arith.constant 9.99999996E-13 : f32
    %342 = vector.broadcast %cst_109 : f32 to vector<16x1xf32>
    %343 = arith.addf %339, %342 : vector<16x1xf32>
    %344 = math.rsqrt %343 : vector<16x1xf32>
    %345 = vector.broadcast %344 : vector<16x1xf32> to vector<16x32xf32>
    %346 = arith.mulf %341, %345 : vector<16x32xf32>
    %347 = vector.broadcast %327 : vector<1x32xf32> to vector<16x32xf32>
    %348 = arith.mulf %346, %347 : vector<16x32xf32>
    %349 = vector.broadcast %328 : vector<1x32xf32> to vector<16x32xf32>
    %350 = arith.addf %348, %349 : vector<16x32xf32>
    %351 = vector.extract_strided_slice %350 {offsets = [0, 0], sizes = [1, 32], strides = [1, 1]} : vector<16x32xf32> to vector<1x32xf32>
    %352 = vector.extract_strided_slice %350 {offsets = [8, 0], sizes = [1, 32], strides = [1, 1]} : vector<16x32xf32> to vector<1x32xf32>
    %353 = tpu.concatenate %351, %352 in 0 : vector<1x32xf32>, vector<1x32xf32> -> vector<2x32xf32>
    %c2_110 = arith.constant 2 : index
    %c0_111 = arith.constant 0 : index
    %c0_112 = arith.constant 0 : index
    %354 = vector.load %arg1[%c2_110, %c0_111, %c0_112] : memref<3x32x192xf32, #tpu.memory_space<vmem>>, vector<1x32x192xf32>
    %355 = vector.shape_cast %354 : vector<1x32x192xf32> to vector<32x192xf32>
    %356 = vector.extract_strided_slice %355 {offsets = [0, 0], sizes = [32, 32], strides = [1, 1]} : vector<32x192xf32> to vector<32x32xf32>
    %cst_113 = arith.constant dense<0.000000e+00> : vector<2x32xf32>
    %357 = tpu.matmul %353, %356, %cst_113 {dimension_numbers = #tpu.dot_dimension_numbers<[1], [0], [0], [1], [0, 0, 1, 1], [], []>} : vector<2x32xf32>, vector<32x32xf32>, vector<2x32xf32> -> vector<2x32xf32>
    %c18 = arith.constant 18 : index
    %c0_114 = arith.constant 0 : index
    %358 = vector.load %arg3[%c18, %c0_114] : memref<20x96xf32, #tpu.memory_space<vmem>>, vector<1x32xf32>
    %359 = vector.broadcast %358 : vector<1x32xf32> to vector<2x32xf32>
    %360 = arith.addf %357, %359 : vector<2x32xf32>
    %361 = math.tanh %360 : vector<2x32xf32>
    %362 = vector.extract_strided_slice %355 {offsets = [0, 32], sizes = [32, 16], strides = [1, 1]} : vector<32x192xf32> to vector<32x16xf32>
    %cst_115 = arith.constant dense<0.000000e+00> : vector<2x16xf32>
    %363 = tpu.matmul %361, %362, %cst_115 {dimension_numbers = #tpu.dot_dimension_numbers<[1], [0], [0], [1], [0, 0, 1, 1], [], []>} : vector<2x32xf32>, vector<32x16xf32>, vector<2x16xf32> -> vector<2x16xf32>
    %c19 = arith.constant 19 : index
    %c0_116 = arith.constant 0 : index
    %364 = vector.load %arg3[%c19, %c0_116] : memref<20x96xf32, #tpu.memory_space<vmem>>, vector<1x16xf32>
    %365 = vector.broadcast %364 : vector<1x16xf32> to vector<2x16xf32>
    %366 = arith.addf %363, %365 : vector<2x16xf32>
    %c0_117 = arith.constant 0 : index
    %c0_118 = arith.constant 0 : index
    %367 = vector.load %arg4[%c0_117, %c0_118] : memref<2x16xf32, #tpu.memory_space<vmem>>, vector<2x16xf32>
    tpu.vector_store %arg4[%c0_117, %c0_118], %366 {strides = array<i32>} : memref<2x16xf32, #tpu.memory_space<vmem>>, vector<2x16xf32>,
    return
  }
}

</mosaic_0001>

<bundles_post_ra>
// kernel: tpu_custom_call.1
= control target key start
LH: loop header
LB: loop body
LE: loop exit
PB: predicated region body
PF: predicated region fallthrough
CT: control target
= control target key end

     0   :  { %9 = vsyncpa [#allocation3], 0  ;;  %s4411_s0 = inlined_call_operand.hbm [shape: f32[17,32], index: 0, kind: input, shape index: {}]   ;;  %s4412_s1 = inlined_call_operand.vmem [shape: f32[3,32,192], index: 1, kind: input, shape index: {}]   ;;  %s4413_s2 = inlined_call_operand.vmem [shape: f32[2,64,32], index: 2, kind: input, shape index: {}]   ;;  %s4414_s3 = inlined_call_operand.hbm [shape: f32[20,96], index: 3, kind: input, shape index: {}]   ;;  %s4415_s4 = inlined_call_operand.hbm [shape: f32[2,16], index: 4, kind: output, shape index: {}]  }
   0x1   :  { %10 = vsyncpa [#allocation6], 0 }
   0x2   :  { %11 = vsyncpa [#allocation4], 0  ;;  %s3879_s15 = smov [#allocation2]   ;;  %s3807_s19 = scalar_lea.hbm %s4411_s0, 384 }
   0x3   :  { %s17_s16 = sshll.u32 %s3879_s15, 4  ;;  %p3808_p0 = scmp.ne.s32.totalorder %s4411_s0, %s3807_s19  ;;  %s18_s16 = int_to_ptr.vmem [resolvable:$true] %s17_s16 }
   0x4   :  { %p3811_p1 = scmp.lt.u32.totalorder %s3807_s19, %s4411_s0 }
   0x6   :  { %p3813_p2 = pnand %p3811_p1, %p3808_p0 }
   0x8   :  { %3816 = shalt.err (!%p3813_p2)
}
   0x9   :  { %s3817_s24 = scalar_lea.vmem %s18_s16, 384  ;;  %p3822_p4 = scmp.lt.s32.totalorder %s18_s16, %s18_s16 }
   0xa   :  { %p3818_p3 = scmp.ne.s32.totalorder %s18_s16, %s3817_s24  ;;  %p3823_p5 = scmp.lt.s32.totalorder %s3817_s24, %s3817_s24 }
   0xc   :  { %p3824_p6 = por %p3823_p5, %p3822_p4 }
   0xe   :  { %p3825_p7 = pnand %p3824_p6, %p3818_p3 }
  0x10   :  { %3828 = shalt.err (!%p3825_p7)
}
  0x11   :  { %s3880_s25 = smov 128   ;;  %s3881_s26 = smov 8  }
  0x12   :  { %23 = dma.hbm_to_vmem [thread:$0]  %s4411_s0, 384, %s18_s16, [#allocation3], %s3880_s25, %s3880_s25, %s3881_s26  }
  0x13   :  { %s3882_s29 = smov [#allocation5]   ;;  %s3829_s7 = scalar_lea.hbm %s4414_s3, 384 }
  0x14   :  { %s33_s30 = sshll.u32 %s3882_s29, 4  ;;  %p3830_p8 = scmp.ne.s32.totalorder %s4414_s3, %s3829_s7  ;;  %s34_s30 = int_to_ptr.vmem [resolvable:$true] %s33_s30 }
  0x15   :  { %p3833_p9 = scmp.lt.u32.totalorder %s3829_s7, %s4414_s3 }
  0x17   :  { %p3835_p10 = pnand %p3833_p9, %p3830_p8 }
  0x19   :  { %3838 = shalt.err (!%p3835_p10)
}
  0x1a   :  { %s3839_s12 = scalar_lea.vmem %s34_s30, 384  ;;  %p3844_p12 = scmp.lt.s32.totalorder %s34_s30, %s34_s30 }
  0x1b   :  { %p3840_p11 = scmp.ne.s32.totalorder %s34_s30, %s3839_s12  ;;  %p3845_p13 = scmp.lt.s32.totalorder %s3839_s12, %s3839_s12 }
  0x1d   :  { %p3846_p0 = por %p3845_p13, %p3844_p12 }
  0x1f   :  { %p3847_p1 = pnand %p3846_p0, %p3840_p11 }
  0x21   :  { %3850 = shalt.err (!%p3847_p1)
}
  0x22   :  { %39 = dma.hbm_to_vmem [thread:$0]  %s4414_s3, 384, %s34_s30, [#allocation6], %s3880_s25, %s3880_s25, %s3881_s26  }
  0x23   :  { %3873 = dma.done.wait [#allocation3], 384  }
  0x24   :  { %3874 = vsyncadd [#allocation3], 4294966912 }
  0x25   :  { %3875 = dma.done.wait [#allocation6], 384  }
  0x26   :  { %3876 = vsyncadd [#allocation6], 4294966912  ;;  %vm67_vm0 = vcmask 261120   ;;  %v63_v0 = vld [vmem:[#allocation2] sm:$0xff]  ;;  %v64_v1 = vld [vmem:[#allocation2 + $0x8] sm:$0xff]  ;;  %vm209_vm1 = vcmask 64512   ;;  %v47_v56 = vlaneseq }
  0x27   :  { %v68_v2 = vsel %vm67_vm0, %v63_v0, 0.0  ;;  %v71_v3 = vsel %vm67_vm0, %v64_v1, 0.0  ;;  %v3959_v14 = vld [vmem:[%s4412_s1] sm:$0xff]  ;;  %v3964_v15 = vld [vmem:[%s4412_s1 + $0x10] sm:$0xff]  ;;  %v2935_v28 = vld [vmem:[#allocation5] ss:$0 sm:$0xff] }
  0x28   :  { %69 = vadd.xlane.f32.xlu0 %v68_v2  ;;  %v3969_v16 = vld [vmem:[%s4412_s1 + $0x20] sm:$0xff]  ;;  %v3643_v17 = vpack.i.bf16 %v3964_v15, %v3959_v14  ;;  %v3409_v18 = vpack.c.bf16 %v3964_v15, %v3959_v14  ;;  %v3978_v19 = vld [vmem:[%s4412_s1 + $0x30] sm:$0xff]  ;;  %v2936_v30 = vld [vmem:[#allocation5 + $0x1] ss:$0 sm:$0xff]  ;;  %s3883_s21 = smov 88   ;;  %s3884_s22 = smov 96  }
  0x29   :  { %v3413_v20 = vpack.c.bf16 %v3978_v19, %v3969_v16  ;;  %v2937_v37 = vld [vmem:[#allocation5 + $0x2] ss:$0 sm:$0xff]  ;;  %s3885_s23 = smov 120   ;;  %vm4008_vm2 = vmpackc.low %vm209_vm1, %vm209_vm1  ;;  %v48_v57 = vshrl.u32 %v47_v56, 7  ;;  %v51_v59 = vand.u32 127, %v47_v56  ;;  %vm295_vm5 = vcmask 130048  }
  0x2a   :  { %3410 = vmatprep.subr.bf16.mxu0 %v3409_v18  ;;  %v2934_v63 = vld [vmem:[#allocation2 + $0x10] ss:$0 sm:$0xff]  ;;  %s3886_s24 = smov 56   ;;  %s3887_s25 = smov 64   ;;  %vm1033_vm6 = vcmask 195584   ;;  %vm1297_vm7 = vcmask 523264  }
  0x2b   :  { %3412 = vmatpush3.bf16.msra.mxu0 %v3409_v18  ;;  %v49_v58 = vadd.s32 8, %v48_v57  ;;  %v54_v61 = vand.u32 4294967288, %v51_v59  ;;  %v52_v62 = vand.u32 4294967288, %v48_v57  ;;  %s3888_s27 = smov 80   ;;  %s3889_s28 = smov 112   ;;  %vm3898_vm8 = vmmov 0  }
  0x2c   :  { %72 = vadd.xlane.f32.xlu0 %v71_v3  ;;  %3414 = vmatprep.subr.bf16.mxu0 %v3413_v20  ;;  %s3890_s29 = smov 48   ;;  %s3891_s30 = smov 104   ;;  %vm2736_vm9 = vcmask 1040384   ;;  %vm2916_vm10 = vcmask 123904  }
  0x2d   :  { %v53_v60 = vand.u32 4294967288, %v49_v58  ;;  %vm55_vm4 = vcmp.eq.s32.totalorder %v52_v62, %v54_v61  ;;  %s3892_s5 = smov 72   ;;  %s3893_s6 = smov 40  }
  0x2e   :  { %s3894_s7 = smov 32   ;;  %s3895_s8 = smov 16  }
  0x2f   :  { %3416 = vmatpush3.bf16.msra.mxu0 %v3413_v20  ;;  %vm56_vm3 = vcmp.eq.s32.totalorder %v53_v60, %v54_v61  ;;  %s3896_s9 = smov 24  }
  0xb5   :  { %v70_v4 = vpop.xlane.xlu0 %69 }
  0xb6   :  { %v75_v5 = vmul.f32 0.03125, %v70_v4 }
  0xb8   :  { %v77_v6 = vsub.f32 %v63_v0, %v75_v5  ;;  %v4024_v0 = vsel %vm56_vm3, %v2934_v63, -1e+09 }
  0xb9   :  { %v73_v7 = vpop.xlane.xlu0 %72 }
  0xba   :  { %v76_v8 = vmul.f32 0.03125, %v73_v7  ;;  %v79_v9 = vmul.f32 %v77_v6, %v77_v6 }
  0xbc   :  { %v78_v10 = vsub.f32 %v64_v1, %v76_v8  ;;  %v81_v11 = vsel %vm67_vm0, %v79_v9, 0.0  ;;  %v4026_v1 = vsel %vm55_vm4, %v2934_v63, -1e+09 }
  0xbd   :  { %82 = vadd.xlane.f32.xlu1 %v81_v11 }
  0xbe   :  { %v80_v12 = vmul.f32 %v78_v10, %v78_v10 }
  0xc0   :  { %v84_v13 = vsel %vm67_vm0, %v80_v12, 0.0 }
  0xc1   :  { %85 = vadd.xlane.f32.xlu1 %v84_v13 }
 0x14a   :  { %v83_v21 = vpop.xlane.xlu1 %82 }
 0x14b   :  { %v87_v22 = vmul.f32 0.03125, %v83_v21 }
 0x14d   :  { %v89_v23 = vadd.f32 1e-12, %v87_v22 }
 0x14e   :  { %v86_v24 = vpop.xlane.xlu1 %85 }
 0x14f   :  { %3713 = vrsqrt.f32 %v89_v23  ;;  %v88_v25 = vmul.f32 0.03125, %v86_v24 }
 0x151   :  { %v90_v26 = vadd.f32 1e-12, %v88_v25 }
 0x153   :  { %3715 = vrsqrt.f32 %v90_v26 }
 0x159   :  { %v3714_v27 = vpop.eup %3713 }
 0x15a   :  { %v93_v29 = vmul.f32 %v3714_v27, %v77_v6 }
 0x15c   :  { %v99_v31 = vmul.f32 %v2935_v28, %v93_v29 }
 0x15d   :  { %v3716_v32 = vpop.eup %3715 }
 0x15e   :  { %v94_v33 = vmul.f32 %v3716_v32, %v78_v10  ;;  %v3982_v34 = vadd.f32 %v2936_v30, %v99_v31 }
 0x160   :  { %v100_v35 = vmul.f32 %v2935_v28, %v94_v33  ;;  %3179 = vmatprep.mubr.msk.f32.mxu0 %vm67_vm0, %v3982_v34 }
 0x162   :  { %v3986_v36 = vadd.f32 %v2936_v30, %v100_v35 }
 0x164   :  { %3180 = vmatmul.mubr.msk.f32.vlgmr.msra.gmra.mrb[0].mxu0 %vm67_vm0, %v3986_v36 }
 0x237   :  { %v3181_v38 = vpop.f32.mrb[0].mxu0 }
 0x238   :  { %v198_v39 = vadd.f32 %v3181_v38, %v2937_v37  ;;  %v192_v40 = vpop.f32.mrb[1].mxu0 }
 0x239   :  { %v193_v41 = vadd.f32 %v2937_v37, %v192_v40 }
 0x23a   :  { %v4002_v44 = vmul.f32 0.35355338, %v198_v39 }
 0x23b   :  { %v3990_v42 = vpack.i.bf16 %v198_v39, %v193_v41  ;;  %v3992_v43 = vmul.f32 0.35355338, %v193_v41 }
 0x23d   :  { %3609 = vrot.lane.b32.xlu1 %v3990_v42, %s3883_s21  ;;  %3604 = vrot.lane.b32.xlu0 %v3990_v42, %s3884_s22 }
 0x23e   :  { %3186 = vmatprep.mubr.msk.f32.mxu1 %vm209_vm1, %v3992_v43 }
 0x241   :  { %405 = vrot.lane.b32.xlu1 %v3992_v43, %s3885_s23 }
 0x245   :  { %407 = vrot.lane.b32.xlu1 %v4002_v44, %s3885_s23 }
 0x2af   :  { %v3610_v45 = vpop.permute.xlu1 %3609  ;;  %v3605_v46 = vpop.permute.xlu0 %3604 }
 0x2b0   :  { %v3612_v47 = vunpack.i.h.bf16 %v3610_v45  ;;  %v3611_v48 = vunpack.i.l.bf16 %v3610_v45  ;;  %v3607_v49 = vunpack.i.h.bf16 %v3605_v46  ;;  %v3606_v50 = vunpack.i.l.bf16 %v3605_v46 }
 0x2b2   :  { %v3417_v52 = vpack.c.bf16 %v3607_v49, %v3606_v50  ;;  %v3427_v53 = vpack.c.bf16 %v3612_v47, %v3611_v48 }
 0x2b3   :  { %v406_v54 = vpop.permute.xlu1 %405 }
 0x2b4   :  { %3419 = vmatprep.subr.msk.bf16.mxu1 %vm4008_vm2, %v3417_v52 }
 0x2b5   :  { %3422 = vmatpush3.bf16.xpose.msk.msra.mxu1 %vm4008_vm2, %v3417_v52 }
 0x2b6   :  { %3429 = vmatprep.subr.msk.bf16.mxu1 %vm4008_vm2, %v3427_v53 }
 0x2b7   :  { %v408_v55 = vpop.permute.xlu1 %407 }
 0x2bc   :  { %3187 = vmatmul.mubr.msk.f32.vlgmr.msra.gmra.mrb[0].mxu1 %vm209_vm1, %v4002_v44 }
 0x2bd   :  { %3432 = vmatpush3.bf16.xpose.msk.msra.mxu1 %vm4008_vm2, %v3427_v53  ;;  %3200 = vmatprep.mubr.msk.f32.mxu1 %vm209_vm1, %v406_v54 }
 0x2c4   :  { %3201 = vmatmul.mubr.msk.f32.vlgmr.msra.gmra.mrb[2].mxu1 %vm209_vm1, %v408_v55 }
 0x38f   :  { %v3188_v2 = vpop.f32.mrb[0].mxu1 }
 0x390   :  { %v292_v3 = vadd.f32 %v3188_v2, %v4024_v0  ;;  %v286_v4 = vpop.f32.mrb[1].mxu1 }
 0x391   :  { %v287_v5 = vadd.f32 %v286_v4, %v4026_v1 }
 0x392   :  { %v299_v6 = vsel %vm295_vm5, %v292_v3, -inf }
 0x393   :  { %300 = vmax.xlane.f32.xlu1 %v299_v6  ;;  %v296_v7 = vsel %vm295_vm5, %v287_v5, -inf }
 0x394   :  { %297 = vmax.xlane.f32.xlu0 %v296_v7 }
 0x397   :  { %v3202_v8 = vpop.f32.mrb[2].mxu1 }
 0x398   :  { %v487_v9 = vpop.f32.mrb[3].mxu1  ;;  %v493_v11 = vadd.f32 %v3202_v8, %v4024_v0 }
 0x399   :  { %v488_v10 = vadd.f32 %v487_v9, %v4026_v1 }
 0x39a   :  { %v499_v13 = vsel %vm295_vm5, %v493_v11, -inf }
 0x39b   :  { %v496_v12 = vsel %vm295_vm5, %v488_v10, -inf }
 0x39c   :  { %497 = vmax.xlane.f32.xlu0 %v496_v12 }
 0x3a0   :  { %500 = vmax.xlane.f32.xlu0 %v499_v13 }
 0x420   :  { %v301_v18 = vpop.xlane.xlu1 %300 }
 0x421   :  { %v303_v20 = vsub.f32 %v292_v3, %v301_v18  ;;  %v298_v21 = vpop.xlane.xlu0 %297 }
 0x422   :  { %v302_v22 = vsub.f32 %v287_v5, %v298_v21 }
 0x423   :  { %v306_v23 = vmul.f32 1.442695, %v303_v20 }
 0x424   :  { %v304_v24 = vmul.f32 1.442695, %v302_v22 }
 0x425   :  { %3717 = vpow2.f32 %v306_v23 }
 0x426   :  { %3719 = vpow2.f32 %v304_v24 }
 0x429   :  { %v498_v25 = vpop.xlane.xlu0 %497 }
 0x42a   :  { %v502_v26 = vsub.f32 %v488_v10, %v498_v25 }
 0x42c   :  { %v504_v27 = vmul.f32 1.442695, %v502_v26 }
 0x42d   :  { %v501_v28 = vpop.xlane.xlu0 %500 }
 0x42e   :  { %3721 = vpow2.f32 %v504_v27  ;;  %v503_v29 = vsub.f32 %v493_v11, %v501_v28 }
 0x42f   :  { %v3718_v30 = vpop.eup %3717 }
 0x430   :  { %v3720_v31 = vpop.eup %3719  ;;  %v506_v32 = vmul.f32 1.442695, %v503_v29  ;;  %v311_v33 = vsel %vm295_vm5, %v3718_v30, 0.0 }
 0x431   :  { %312 = vadd.xlane.f32.xlu1 %v311_v33  ;;  %v308_v35 = vsel %vm295_vm5, %v3720_v31, 0.0 }
 0x432   :  { %3723 = vpow2.f32 %v506_v32  ;;  %309 = vadd.xlane.f32.xlu0 %v308_v35 }
 0x438   :  { %v3722_v37 = vpop.eup %3721 }
 0x439   :  { %v508_v38 = vsel %vm295_vm5, %v3722_v37, 0.0 }
 0x43a   :  { %509 = vadd.xlane.f32.xlu0 %v508_v38 }
 0x43c   :  { %v3724_v39 = vpop.eup %3723 }
 0x43d   :  { %v511_v40 = vsel %vm295_vm5, %v3724_v39, 0.0 }
 0x43e   :  { %512 = vadd.xlane.f32.xlu1 %v511_v40 }
 0x44f   :  { %3619 = vrot.lane.b32.xlu1 %v3990_v42, %s3886_s24 }
 0x450   :  { %3614 = vrot.lane.b32.xlu0 %v3990_v42, %s3887_s25 }
 0x453   :  { %3624 = vrot.lane.b32.xlu1 %v3990_v42, %s3888_s27 }
 0x454   :  { %607 = vrot.lane.b32.xlu0 %v4002_v44, %s3889_s28 }
 0x457   :  { %605 = vrot.lane.b32.xlu1 %v3992_v43, %s3889_s28 }
 0x4be   :  { %v313_v45 = vpop.xlane.xlu1 %312 }
 0x4bf   :  { %v310_v41 = vpop.xlane.xlu0 %309 }
 0x4c0   :  { %3725 = vrcp.f32 %v310_v41 }
 0x4c1   :  { %3727 = vrcp.f32 %v313_v45 }
 0x4c7   :  { %v510_v46 = vpop.xlane.xlu0 %509 }
 0x4c8   :  { %3729 = vrcp.f32 %v510_v46 }
 0x4ca   :  { %v3726_v47 = vpop.eup %3725 }
 0x4cb   :  { %v513_v48 = vpop.xlane.xlu1 %512  ;;  %v3615_v49 = vpop.permute.xlu0 %3614  ;;  %v316_v50 = vmul.f32 %v3726_v47, %v3720_v31 }
 0x4cc   :  { %3731 = vrcp.f32 %v513_v48  ;;  %v3617_v52 = vunpack.i.h.bf16 %v3615_v49  ;;  %v3616_v53 = vunpack.i.l.bf16 %v3615_v49  ;;  %v3728_v55 = vpop.eup %3727 }
 0x4cd   :  { %3193 = vmatprep.mubr.msk.f32.mxu0 %vm295_vm5, %v316_v50  ;;  %v317_v60 = vmul.f32 %v3728_v55, %v3718_v30 }
 0x4ce   :  { %v3423_v54 = vpack.c.bf16 %v3617_v52, %v3616_v53 }
 0x4cf   :  { %v3620_v56 = vpop.permute.xlu1 %3619  ;;  %v608_v8 = vpop.permute.xlu0 %607 }
 0x4d0   :  { %v3622_v57 = vunpack.i.h.bf16 %v3620_v56  ;;  %v3621_v58 = vunpack.i.l.bf16 %v3620_v56  ;;  %3424 = vmatprep.subr.bf16.mxu0 %v3423_v54 }
 0x4d1   :  { %3426 = vmatpush3.bf16.msra.mxu0 %v3423_v54 }
 0x4d2   :  { %v3730_v59 = vpop.eup %3729  ;;  %v3433_v61 = vpack.c.bf16 %v3622_v57, %v3621_v58 }
 0x4d3   :  { %v3625_v62 = vpop.permute.xlu1 %3624  ;;  %v516_v63 = vmul.f32 %v3730_v59, %v3722_v37 }
 0x4d4   :  { %v3627_v2 = vunpack.i.h.bf16 %v3625_v62  ;;  %v3626_v3 = vunpack.i.l.bf16 %v3625_v62  ;;  %3194 = vmatmul.mubr.msk.f32.vlgmr.msra.gmra.mrb[2].mxu0 %vm295_vm5, %v317_v60  ;;  %3434 = vmatprep.subr.bf16.mxu0 %v3433_v61  ;;  %v3648_v62 = vpack.i.bf16 %v3978_v19, %v3969_v16 }
 0x4d5   :  { %3436 = vmatpush3.bf16.msra.mxu0 %v3433_v61  ;;  %3207 = vmatprep.mubr.msk.f32.mxu0 %vm295_vm5, %v516_v63 }
 0x4d6   :  { %v3732_v4 = vpop.eup %3731  ;;  %v3437_v5 = vpack.c.bf16 %v3627_v2, %v3626_v3 }
 0x4d7   :  { %v517_v6 = vmul.f32 %v3732_v4, %v3724_v39  ;;  %v606_v7 = vpop.permute.xlu1 %605 }
 0x4d8   :  { %3439 = vmatprep.subr.msk.bf16.mxu0 %vm4008_vm2, %v3437_v5 }
 0x4d9   :  { %3208 = vmatmul.mubr.msk.f32.vlgmr.msra.gmra.mrb[4].mxu0 %vm295_vm5, %v517_v6 }
 0x4da   :  { %3214 = vmatprep.mubr.msk.f32.mxu0 %vm209_vm1, %v606_v7 }
 0x4de   :  { %3442 = vmatpush3.bf16.xpose.msk.msra.mxu0 %vm4008_vm2, %v3437_v5 }
 0x4e5   :  { %3215 = vmatmul.mubr.msk.f32.vlgmr.msra.gmra.mrb[6].mxu0 %vm209_vm1, %v608_v8 }
 0x5a7   :  { %v4060_v9 = vpop.f32.mrb[2].mxu0 }
 0x5a8   :  { %v4062_v10 = vpop.f32.mrb[3].mxu0 }
 0x5ac   :  { %v4064_v11 = vpop.f32.mrb[4].mxu0 }
 0x5ad   :  { %v4066_v12 = vpop.f32.mrb[5].mxu0 }
 0x5b8   :  { %v3216_v13 = vpop.f32.mrb[6].mxu0 }
 0x5b9   :  { %v693_v18 = vadd.f32 %v3216_v13, %v4024_v0  ;;  %v687_v20 = vpop.f32.mrb[7].mxu0 }
 0x5ba   :  { %v688_v21 = vadd.f32 %v687_v20, %v4026_v1 }
 0x5bb   :  { %v699_v22 = vsel %vm295_vm5, %v693_v18, -inf }
 0x5bc   :  { %700 = vmax.xlane.f32.xlu0 %v699_v22  ;;  %v696_v23 = vsel %vm295_vm5, %v688_v21, -inf }
 0x5bd   :  { %697 = vmax.xlane.f32.xlu1 %v696_v23 }
 0x5ce   :  { %3629 = vrot.lane.b32.xlu1 %v3990_v42, %s3890_s29 }
 0x5d2   :  { %805 = vrot.lane.b32.xlu1 %v3992_v43, %s3891_s30 }
 0x5d6   :  { %807 = vrot.lane.b32.xlu1 %v4002_v44, %s3891_s30 }
 0x649   :  { %v701_v24 = vpop.xlane.xlu0 %700 }
 0x64a   :  { %v703_v25 = vsub.f32 %v693_v18, %v701_v24  ;;  %v698_v26 = vpop.xlane.xlu1 %697 }
 0x64b   :  { %v702_v27 = vsub.f32 %v688_v21, %v698_v26 }
 0x64c   :  { %v706_v28 = vmul.f32 1.442695, %v703_v25 }
 0x64d   :  { %v704_v29 = vmul.f32 1.442695, %v702_v27 }
 0x64e   :  { %3733 = vpow2.f32 %v706_v28  ;;  %v3630_v30 = vpop.permute.xlu1 %3629 }
 0x64f   :  { %v3632_v31 = vunpack.i.h.bf16 %v3630_v30  ;;  %v3631_v32 = vunpack.i.l.bf16 %v3630_v30  ;;  %3735 = vpow2.f32 %v704_v29 }
 0x651   :  { %v3443_v33 = vpack.c.bf16 %v3632_v31, %v3631_v32 }
 0x652   :  { %v806_v52 = vpop.permute.xlu1 %805 }
 0x653   :  { %3444 = vmatprep.subr.bf16.mxu1 %v3443_v33 }
 0x654   :  { %3446 = vmatpush3.bf16.msra.mxu1 %v3443_v33 }
 0x656   :  { %v808_v53 = vpop.permute.xlu1 %807 }
 0x658   :  { %v3734_v35 = vpop.eup %3733 }
 0x659   :  { %v711_v43 = vsel %vm295_vm5, %v3734_v35, 0.0  ;;  %v3736_v37 = vpop.eup %3735 }
 0x65a   :  { %712 = vadd.xlane.f32.xlu0 %v711_v43  ;;  %v708_v44 = vsel %vm295_vm5, %v3736_v37, 0.0 }
 0x65e   :  { %709 = vadd.xlane.f32.xlu0 %v708_v44 }
 0x674   :  { %3634 = vrot.lane.b32.xlu0 %v3990_v42, %s3892_s5 }
 0x6e7   :  { %v713_v38 = vpop.xlane.xlu0 %712 }
 0x6e8   :  { %3737 = vrcp.f32 %v713_v38 }
 0x6eb   :  { %v710_v39 = vpop.xlane.xlu0 %709 }
 0x6ec   :  { %3739 = vrcp.f32 %v710_v39 }
 0x6ef   :  { %v3635_v40 = vpop.permute.xlu0 %3634 }
 0x6f0   :  { %v3637_v41 = vunpack.i.h.bf16 %v3635_v40  ;;  %v3636_v45 = vunpack.i.l.bf16 %v3635_v40 }
 0x6f2   :  { %v3447_v46 = vpack.c.bf16 %v3637_v41, %v3636_v45  ;;  %v3738_v47 = vpop.eup %3737 }
 0x6f3   :  { %v717_v50 = vmul.f32 %v3738_v47, %v3734_v35  ;;  %v2964_v47 = vld [vmem:[#allocation5 + $0x3] ss:$0 sm:$0xff] }
 0x6f4   :  { %3449 = vmatprep.subr.msk.bf16.mxu1 %vm4008_vm2, %v3447_v46 }
 0x6f6   :  { %v3740_v48 = vpop.eup %3739 }
 0x6f7   :  { %v716_v49 = vmul.f32 %v3740_v48, %v3736_v37 }
 0x6f9   :  { %3221 = vmatprep.mubr.msk.f32.mxu1 %vm295_vm5, %v716_v49 }
 0x6fa   :  { %3222 = vmatmul.mubr.msk.f32.vlgmr.msra.gmra.mrb[4].mxu1 %vm295_vm5, %v717_v50 }
 0x6fb   :  { %3452 = vmatpush3.bf16.xpose.msk.msra.mxu1 %vm4008_vm2, %v3447_v46  ;;  %3228 = vmatprep.mubr.msk.f32.mxu1 %vm209_vm1, %v806_v52 }
 0x702   :  { %3229 = vmatmul.mubr.msk.f32.vlgmr.msra.gmra.mrb[6].mxu1 %vm209_vm1, %v808_v53 }
 0x7cd   :  { %v3223_v54 = vpop.f32.mrb[4].mxu1 }
 0x7ce   :  { %v796_v55 = vpop.f32.mrb[5].mxu1 }
 0x7d5   :  { %v3230_v56 = vpop.f32.mrb[6].mxu1 }
 0x7d6   :  { %v893_v57 = vadd.f32 %v3230_v56, %v4024_v0  ;;  %v887_v58 = vpop.f32.mrb[7].mxu1 }
 0x7d7   :  { %v888_v59 = vadd.f32 %v887_v58, %v4026_v1 }
 0x7d8   :  { %v899_v60 = vsel %vm295_vm5, %v893_v57, -inf }
 0x7d9   :  { %900 = vmax.xlane.f32.xlu0 %v899_v60  ;;  %v896_v61 = vsel %vm295_vm5, %v888_v59, -inf }
 0x7da   :  { %897 = vmax.xlane.f32.xlu1 %v896_v61 }
 0x7eb   :  { %3639 = vrot.lane.b32.xlu1 %v3990_v42, %s3893_s6 }
 0x7ef   :  { %3649 = vrot.lane.b32.xlu1 %v3648_v62, %s3894_s7 }
 0x7f3   :  { %1007 = vrot.lane.b32.xlu1 %v4066_v12, %s3881_s26 }
 0x7f7   :  { %1009 = vrot.lane.b32.xlu1 %v4064_v11, %s3881_s26 }
 0x7fb   :  { %1017 = vrot.lane.b32.xlu1 %v3223_v54, %s3895_s8 }
 0x866   :  { %v901_v63 = vpop.xlane.xlu0 %900 }
 0x867   :  { %v903_v2 = vsub.f32 %v893_v57, %v901_v63  ;;  %v898_v3 = vpop.xlane.xlu1 %897 }
 0x868   :  { %v902_v4 = vsub.f32 %v888_v59, %v898_v3 }
 0x869   :  { %v906_v42 = vmul.f32 1.442695, %v903_v2  ;;  %v110_v2 = vld [vmem:[%s4412_s1 + $0x18] sm:$0xff] }
 0x86a   :  { %v904_v5 = vmul.f32 1.442695, %v902_v4  ;;  %v112_v4 = vld [vmem:[%s4412_s1 + $0x28] sm:$0xff] }
 0x86b   :  { %v3640_v6 = vpop.permute.xlu1 %3639 }
 0x86c   :  { %3741 = vpow2.f32 %v904_v5  ;;  %v3642_v16 = vunpack.i.h.bf16 %v3640_v6  ;;  %v3641_v19 = vunpack.i.l.bf16 %v3640_v6 }
 0x86d   :  { %3743 = vpow2.f32 %v906_v42  ;;  %v114_v42 = vld [vmem:[%s4412_s1 + $0x38] sm:$0xff] }
 0x86e   :  { %v3453_v7 = vpack.c.bf16 %v3642_v16, %v3641_v19  ;;  %v3469_v5 = vpack.c.bf16 %v114_v42, %v112_v4 }
 0x86f   :  { %v3650_v25 = vpop.permute.xlu1 %3649 }
 0x870   :  { %3454 = vmatprep.subr.bf16.mxu0 %v3453_v7  ;;  %v3652_v27 = vunpack.i.h.bf16 %v3650_v25  ;;  %v3651_v28 = vunpack.i.l.bf16 %v3650_v25 }
 0x871   :  { %3456 = vmatpush3.bf16.msra.mxu0 %v3453_v7 }
 0x872   :  { %v3461_v15 = vpack.c.bf16 %v3652_v27, %v3651_v28  ;;  %v1284_v27 = vld [vmem:[%s4413_s2] sm:$0xff]  ;;  %v1285_v28 = vld [vmem:[%s4413_s2 + $0x8] sm:$0xff] }
 0x873   :  { %v1008_v32 = vpop.permute.xlu1 %1007 }
 0x874   :  { %v1029_v37 = vsel %vm209_vm1, %v4062_v10, %v1008_v32 }
 0x876   :  { %v3742_v8 = vpop.eup %3741 }
 0x877   :  { %v908_v11 = vsel %vm295_vm5, %v3742_v8, 0.0  ;;  %v3744_v12 = vpop.eup %3743  ;;  %v1010_v33 = vpop.permute.xlu1 %1009 }
 0x878   :  { %909 = vadd.xlane.f32.xlu0 %v908_v11  ;;  %v911_v13 = vsel %vm295_vm5, %v3744_v12, 0.0  ;;  %v1030_v38 = vsel %vm209_vm1, %v4060_v9, %v1010_v33  ;;  %v1290_v33 = vld [vmem:[%s4413_s2 + $0x30] sm:$0xff] }
 0x87b   :  { %v1018_v35 = vpop.permute.xlu1 %1017 }
 0x87c   :  { %912 = vadd.xlane.f32.xlu0 %v911_v13  ;;  %v1032_v41 = vsel %vm295_vm5, %v1030_v38, %v1018_v35  ;;  %v2967_v13 = vld [vmem:[#allocation5 + $0x4] ss:$0 sm:$0xff] }
 0x87d   :  { %v1291_v35 = vld [vmem:[%s4413_s2 + $0x38] sm:$0xff] }
 0x892   :  { %3644 = vrot.lane.b32.xlu0 %v3643_v17, %s3894_s7 }
 0x896   :  { %1015 = vrot.lane.b32.xlu0 %v796_v55, %s3895_s8 }
 0x905   :  { %v910_v18 = vpop.xlane.xlu0 %909 }
 0x906   :  { %3745 = vrcp.f32 %v910_v18 }
 0x909   :  { %v913_v20 = vpop.xlane.xlu0 %912 }
 0x90a   :  { %3747 = vrcp.f32 %v913_v20  ;;  %v2968_v20 = vld [vmem:[#allocation5 + $0x5] ss:$0 sm:$0xff] }
 0x90d   :  { %v3645_v21 = vpop.permute.xlu0 %3644 }
 0x90e   :  { %v3647_v22 = vunpack.i.h.bf16 %v3645_v21  ;;  %v3646_v23 = vunpack.i.l.bf16 %v3645_v21 }
 0x910   :  { %v3746_v24 = vpop.eup %3745  ;;  %v3457_v26 = vpack.c.bf16 %v3647_v22, %v3646_v23 }
 0x911   :  { %v916_v29 = vmul.f32 %v3746_v24, %v3742_v8  ;;  %v1016_v43 = vpop.permute.xlu0 %1015 }
 0x912   :  { %3458 = vmatprep.subr.bf16.mxu0 %v3457_v26  ;;  %v1031_v39 = vsel %vm295_vm5, %v1029_v37, %v1016_v43  ;;  %v3485_v43 = vpack.c.bf16 %v1291_v35, %v1290_v33  ;;  %v2969_v37 = vld [vmem:[#allocation5 + $0x6] ss:$0 sm:$0xff]  ;;  %v2976_v35 = vld [vmem:[#allocation5 + $0x9] ss:$0 sm:$0xff] }
 0x913   :  { %3235 = vmatprep.mubr.msk.f32.mxu0 %vm295_vm5, %v916_v29  ;;  %v3473_v29 = vpack.c.bf16 %v1285_v28, %v1284_v27 }
 0x914   :  { %v3748_v14 = vpop.eup %3747 }
 0x915   :  { %v917_v17 = vmul.f32 %v3748_v14, %v3744_v12  ;;  %v1286_v14 = vld [vmem:[%s4413_s2 + $0x10] sm:$0xff] }
 0x917   :  { %3236 = vmatmul.mubr.msk.f32.vlgmr.msra.gmra.mrb[8].mxu0 %vm295_vm5, %v917_v17 }
 0x918   :  { %3460 = vmatpush3.bf16.msra.mxu0 %v3457_v26 }
 0x919   :  { %3462 = vmatprep.subr.bf16.mxu0 %v3461_v15 }
 0x91c   :  { %3464 = vmatpush3.bf16.msra.mxu0 %v3461_v15  ;;  %v1287_v15 = vld [vmem:[%s4413_s2 + $0x18] sm:$0xff] }
 0x91d   :  { %v3477_v17 = vpack.c.bf16 %v1287_v15, %v1286_v14  ;;  %3474 = vmatprep.subr.bf16.mxu0 %v3473_v29 }
 0x9ea   :  { %v3237_v30 = vpop.f32.mrb[8].mxu0 }
 0x9eb   :  { %1025 = vrot.lane.b32.xlu1 %v3237_v30, %s3896_s9  ;;  %v996_v31 = vpop.f32.mrb[9].mxu0  ;;  %v1288_v30 = vld [vmem:[%s4413_s2 + $0x20] sm:$0xff] }
 0x9ec   :  { %1023 = vrot.lane.b32.xlu0 %v996_v31, %s3896_s9  ;;  %v1289_v31 = vld [vmem:[%s4413_s2 + $0x28] sm:$0xff] }
 0x9ed   :  { %v3481_v32 = vpack.c.bf16 %v1289_v31, %v1288_v30  ;;  %v2975_v30 = vld [vmem:[#allocation5 + $0x8] ss:$0 sm:$0xff] }
 0xa5d   :  { %v1026_v44 = vpop.permute.xlu1 %1025 }
 0xa5e   :  { %v1024_v40 = vpop.permute.xlu0 %1023  ;;  %v1035_v46 = vsel %vm1033_vm6, %v1032_v41, %v1026_v44 }
 0xa5f   :  { %v1034_v45 = vsel %vm1033_vm6, %v1031_v39, %v1024_v40 }
 0xa60   :  { %3246 = vmatprep.mubr.msk.f32.mxu0 %vm67_vm0, %v1034_v45 }
 0xa61   :  { %3247 = vmatmul.mubr.msk.f32.vlgmr.msra.gmra.mrb[10].mxu0 %vm67_vm0, %v1035_v46 }
 0xa62   :  { %3476 = vmatpush3.bf16.msra.mxu0 %v3473_v29 }
 0xa63   :  { %3478 = vmatprep.subr.bf16.mxu0 %v3477_v17 }
 0xa66   :  { %3480 = vmatpush3.bf16.msra.mxu0 %v3477_v17 }
 0xa67   :  { %3482 = vmatprep.subr.bf16.mxu0 %v3481_v32 }
 0xa6a   :  { %3484 = vmatpush3.bf16.msra.mxu0 %v3481_v32 }
 0xa6b   :  { %3486 = vmatprep.subr.bf16.mxu0 %v3485_v43 }
 0xa6e   :  { %3488 = vmatpush3.bf16.msra.mxu0 %v3485_v43 }
 0xb34   :  { %v3248_v48 = vpop.f32.mrb[10].mxu0 }
 0xb35   :  { %v1135_v10 = vadd.f32 %v3248_v48, %v2964_v47  ;;  %v1129_v49 = vpop.f32.mrb[11].mxu0 }
 0xb36   :  { %v1130_v50 = vadd.f32 %v2964_v47, %v1129_v49 }
 0xb37   :  { %v1139_v9 = vadd.f32 %v1135_v10, %v3986_v36 }
 0xb38   :  { %v1138_v52 = vadd.f32 %v1130_v50, %v3982_v34  ;;  %v108_v34 = vld [vmem:[%s4412_s1 + $0x8] sm:$0xff] }
 0xb39   :  { %v1145_v53 = vsel %vm67_vm0, %v1139_v9, 0.0  ;;  %v3465_v3 = vpack.c.bf16 %v110_v2, %v108_v34 }
 0xb3a   :  { %1146 = vadd.xlane.f32.xlu1 %v1145_v53  ;;  %v1142_v54 = vsel %vm67_vm0, %v1138_v52, 0.0 }
 0xb3b   :  { %1143 = vadd.xlane.f32.xlu0 %v1142_v54  ;;  %3466 = vmatprep.subr.bf16.mxu1 %v3465_v3 }
 0xb3c   :  { %3468 = vmatpush3.bf16.msra.mxu1 %v3465_v3 }
 0xb3d   :  { %3470 = vmatprep.subr.bf16.mxu1 %v3469_v5 }
 0xb40   :  { %3472 = vmatpush3.bf16.msra.mxu1 %v3469_v5 }
 0xbc7   :  { %v1147_v55 = vpop.xlane.xlu1 %1146 }
 0xbc8   :  { %v1149_v56 = vmul.f32 0.03125, %v1147_v55  ;;  %v1144_v57 = vpop.xlane.xlu0 %1143 }
 0xbc9   :  { %v1148_v58 = vmul.f32 0.03125, %v1144_v57 }
 0xbca   :  { %v1151_v59 = vsub.f32 %v1139_v9, %v1149_v56 }
 0xbcb   :  { %v1150_v60 = vsub.f32 %v1138_v52, %v1148_v58 }
 0xbcc   :  { %v1153_v63 = vmul.f32 %v1151_v59, %v1151_v59 }
 0xbcd   :  { %v1152_v61 = vmul.f32 %v1150_v60, %v1150_v60 }
 0xbce   :  { %v1157_v36 = vsel %vm67_vm0, %v1153_v63, 0.0 }
 0xbcf   :  { %v1154_v62 = vsel %vm67_vm0, %v1152_v61, 0.0  ;;  %v2972_v61 = vld [vmem:[#allocation5 + $0x7] ss:$0 sm:$0xff] }
 0xbd0   :  { %1155 = vadd.xlane.f32.xlu0 %v1154_v62 }
 0xbd4   :  { %1158 = vadd.xlane.f32.xlu0 %v1157_v36 }
 0xc5d   :  { %v1156_v6 = vpop.xlane.xlu0 %1155 }
 0xc5e   :  { %v1160_v16 = vmul.f32 0.03125, %v1156_v6 }
 0xc60   :  { %v1162_v19 = vadd.f32 1e-12, %v1160_v16 }
 0xc61   :  { %v1159_v7 = vpop.xlane.xlu0 %1158 }
 0xc62   :  { %3749 = vrsqrt.f32 %v1162_v19  ;;  %v1161_v8 = vmul.f32 0.03125, %v1159_v7 }
 0xc64   :  { %v1163_v11 = vadd.f32 1e-12, %v1161_v8 }
 0xc66   :  { %3751 = vrsqrt.f32 %v1163_v11 }
 0xc6c   :  { %v3750_v12 = vpop.eup %3749 }
 0xc6d   :  { %v1166_v18 = vmul.f32 %v3750_v12, %v1150_v60 }
 0xc6f   :  { %v1172_v21 = vmul.f32 %v2967_v13, %v1166_v18 }
 0xc70   :  { %v3752_v22 = vpop.eup %3751 }
 0xc71   :  { %v1167_v23 = vmul.f32 %v3752_v22, %v1151_v59  ;;  %v1178_v24 = vadd.f32 %v2968_v20, %v1172_v21  ;;  %v4183_v21 = vld [vmem:[%s4412_s1 + $0x50] sm:$0xff] }
 0xc73   :  { %v1173_v25 = vmul.f32 %v2967_v13, %v1167_v23  ;;  %3257 = vmatprep.mubr.msk.f32.mxu1 %vm67_vm0, %v1178_v24  ;;  %v4190_v23 = vld [vmem:[%s4412_s1 + $0x60] sm:$0xff] }
 0xc75   :  { %v1179_v26 = vadd.f32 %v2968_v20, %v1173_v25  ;;  %v4178_v20 = vld [vmem:[%s4412_s1 + $0x40] sm:$0xff] }
 0xc76   :  { %v3489_v22 = vpack.c.bf16 %v4183_v21, %v4178_v20 }
 0xc77   :  { %3258 = vmatmul.mubr.msk.f32.vlgmr.msra.gmra.mrb[8].mxu1 %vm67_vm0, %v1179_v26 }
 0xc78   :  { %3490 = vmatprep.subr.bf16.mxu1 %v3489_v22 }
 0xc79   :  { %3492 = vmatpush3.bf16.msra.mxu1 %v3489_v22 }
 0xd4a   :  { %v3259_v44 = vpop.f32.mrb[8].mxu1 }
 0xd4b   :  { %v1263_v38 = vadd.f32 %v3259_v44, %v2969_v37  ;;  %v1257_v39 = vpop.f32.mrb[9].mxu1 }
 0xd4c   :  { %v1258_v40 = vadd.f32 %v2969_v37, %v1257_v39  ;;  %v2985_v39 = vld [vmem:[#allocation5 + $0xa] ss:$0 sm:$0xff] }
 0xd4d   :  { %v1269_v41 = vmul.f32 0.044715, %v1263_v38  ;;  %v1267_v58 = vmul.f32 0.5, %v1263_v38 }
 0xd4e   :  { %v1268_v45 = vmul.f32 0.044715, %v1258_v40  ;;  %v1266_v56 = vmul.f32 0.5, %v1258_v40 }
 0xd4f   :  { %v1271_v46 = vmul.f32 %v1269_v41, %v1263_v38 }
 0xd50   :  { %v1270_v47 = vmul.f32 %v1268_v45, %v1258_v40 }
 0xd51   :  { %v1273_v48 = vmul.f32 %v1271_v46, %v1263_v38 }
 0xd52   :  { %v1272_v10 = vmul.f32 %v1270_v47, %v1258_v40 }
 0xd53   :  { %v1275_v49 = vadd.f32 %v1273_v48, %v1263_v38 }
 0xd54   :  { %v1274_v50 = vadd.f32 %v1272_v10, %v1258_v40 }
 0xd55   :  { %v1277_v9 = vmul.f32 0.7978846, %v1275_v49 }
 0xd56   :  { %v1276_v52 = vmul.f32 0.7978846, %v1274_v50 }
 0xd57   :  { %3753 = vtanh.f32 %v1277_v9 }
 0xd58   :  { %3755 = vtanh.f32 %v1276_v52 }
 0xd61   :  { %v3754_v53 = vpop.eup %3753 }
 0xd62   :  { %v3756_v54 = vpop.eup %3755  ;;  %v1281_v55 = vadd.f32 1.0, %v3754_v53 }
 0xd63   :  { %v1280_v57 = vadd.f32 1.0, %v3756_v54 }
 0xd64   :  { %v1283_v60 = vmul.f32 %v1281_v55, %v1267_v58 }
 0xd65   :  { %v1282_v59 = vmul.f32 %v1280_v57, %v1266_v56 }
 0xd67   :  { %3276 = vmatprep.mubr.msk.f32.mxu0 %vm1297_vm7, %v1282_v59 }
 0xd68   :  { %3277 = vmatmul.mubr.msk.f32.vlgmr.msra.gmra.mrb[12].mxu0 %vm1297_vm7, %v1283_v60 }
 0xe3b   :  { %v3278_v62 = vpop.f32.mrb[12].mxu0 }
 0xe3c   :  { %v1376_v63 = vadd.f32 %v3278_v62, %v2972_v61  ;;  %v1370_v36 = vpop.f32.mrb[13].mxu0 }
 0xe3d   :  { %v1371_v34 = vadd.f32 %v2972_v61, %v1370_v36 }
 0xe3e   :  { %v1380_v2 = vadd.f32 %v1376_v63, %v1179_v26 }
 0xe3f   :  { %v1379_v3 = vadd.f32 %v1371_v34, %v1178_v24  ;;  %v4195_v24 = vld [vmem:[%s4412_s1 + $0x70] sm:$0xff] }
 0xe40   :  { %v1386_v4 = vsel %vm67_vm0, %v1380_v2, 0.0  ;;  %v3493_v25 = vpack.c.bf16 %v4195_v24, %v4190_v23  ;;  %v3698_v51 = vpack.i.bf16 %v4195_v24, %v4190_v23 }
 0xe41   :  { %1387 = vadd.xlane.f32.xlu1 %v1386_v4  ;;  %v1383_v42 = vsel %vm67_vm0, %v1379_v3, 0.0 }
 0xe42   :  { %1384 = vadd.xlane.f32.xlu0 %v1383_v42  ;;  %3494 = vmatprep.subr.bf16.mxu1 %v3493_v25 }
 0xe43   :  { %3496 = vmatpush3.bf16.msra.mxu1 %v3493_v25 }
 0xece   :  { %v1388_v5 = vpop.xlane.xlu1 %1387 }
 0xecf   :  { %v1390_v6 = vmul.f32 0.03125, %v1388_v5  ;;  %v1385_v16 = vpop.xlane.xlu0 %1384 }
 0xed0   :  { %v1389_v19 = vmul.f32 0.03125, %v1385_v16 }
 0xed1   :  { %v1392_v7 = vsub.f32 %v1380_v2, %v1390_v6 }
 0xed2   :  { %v1391_v8 = vsub.f32 %v1379_v3, %v1389_v19 }
 0xed3   :  { %v1394_v11 = vmul.f32 %v1392_v7, %v1392_v7 }
 0xed4   :  { %v1393_v12 = vmul.f32 %v1391_v8, %v1391_v8 }
 0xed5   :  { %v1398_v13 = vsel %vm67_vm0, %v1394_v11, 0.0 }
 0xed6   :  { %1399 = vadd.xlane.f32.xlu1 %v1398_v13  ;;  %v1395_v18 = vsel %vm67_vm0, %v1393_v12, 0.0 }
 0xed7   :  { %1396 = vadd.xlane.f32.xlu0 %v1395_v18 }
 0xf63   :  { %v1400_v26 = vpop.xlane.xlu1 %1399 }
 0xf64   :  { %v1402_v27 = vmul.f32 0.03125, %v1400_v26  ;;  %v1397_v28 = vpop.xlane.xlu0 %1396 }
 0xf65   :  { %v1401_v29 = vmul.f32 0.03125, %v1397_v28 }
 0xf66   :  { %v1404_v14 = vadd.f32 1e-12, %v1402_v27 }
 0xf67   :  { %v1403_v15 = vadd.f32 1e-12, %v1401_v29 }
 0xf68   :  { %3757 = vrsqrt.f32 %v1404_v14 }
 0xf69   :  { %3759 = vrsqrt.f32 %v1403_v15 }
 0xf72   :  { %v3758_v17 = vpop.eup %3757 }
 0xf73   :  { %v3760_v31 = vpop.eup %3759  ;;  %v1408_v32 = vmul.f32 %v3758_v17, %v1392_v7 }
 0xf74   :  { %v1407_v33 = vmul.f32 %v3760_v31, %v1391_v8 }
 0xf75   :  { %v1414_v43 = vmul.f32 %v2975_v30, %v1408_v32 }
 0xf76   :  { %v1413_v37 = vmul.f32 %v2975_v30, %v1407_v33 }
 0xf77   :  { %v4201_v38 = vadd.f32 %v2976_v35, %v1414_v43 }
 0xf78   :  { %v4199_v44 = vadd.f32 %v2976_v35, %v1413_v37 }
 0xf7a   :  { %3287 = vmatprep.mubr.msk.f32.mxu1 %vm67_vm0, %v4199_v44 }
 0xf7b   :  { %3288 = vmatmul.mubr.msk.f32.vlgmr.msra.gmra.mrb[10].mxu1 %vm67_vm0, %v4201_v38 }
0x104e   :  { %v3289_v40 = vpop.f32.mrb[10].mxu1 }
0x104f   :  { %v1513_v41 = vadd.f32 %v3289_v40, %v2985_v39  ;;  %v1507_v45 = vpop.f32.mrb[11].mxu1 }
0x1050   :  { %v1508_v46 = vadd.f32 %v2985_v39, %v1507_v45 }
0x1051   :  { %v4219_v10 = vmul.f32 0.35355338, %v1513_v41 }
0x1052   :  { %v4207_v47 = vpack.i.bf16 %v1513_v41, %v1508_v46  ;;  %v4209_v48 = vmul.f32 0.35355338, %v1508_v46 }
0x1054   :  { %3659 = vrot.lane.b32.xlu1 %v4207_v47, %s3883_s21  ;;  %3654 = vrot.lane.b32.xlu0 %v4207_v47, %s3884_s22 }
0x1055   :  { %3294 = vmatprep.mubr.msk.f32.mxu1 %vm209_vm1, %v4209_v48 }
0x1058   :  { %1718 = vrot.lane.b32.xlu1 %v4209_v48, %s3885_s23 }
0x105c   :  { %1720 = vrot.lane.b32.xlu1 %v4219_v10, %s3885_s23 }
0x10c6   :  { %v3660_v49 = vpop.permute.xlu1 %3659  ;;  %v3655_v50 = vpop.permute.xlu0 %3654 }
0x10c7   :  { %v3662_v9 = vunpack.i.h.bf16 %v3660_v49  ;;  %v3661_v52 = vunpack.i.l.bf16 %v3660_v49  ;;  %v3657_v53 = vunpack.i.h.bf16 %v3655_v50  ;;  %v3656_v54 = vunpack.i.l.bf16 %v3655_v50 }
0x10c9   :  { %v3497_v55 = vpack.c.bf16 %v3657_v53, %v3656_v54  ;;  %v3507_v56 = vpack.c.bf16 %v3662_v9, %v3661_v52 }
0x10ca   :  { %v1719_v57 = vpop.permute.xlu1 %1718 }
0x10cb   :  { %3499 = vmatprep.subr.msk.bf16.mxu1 %vm4008_vm2, %v3497_v55 }
0x10cc   :  { %3502 = vmatpush3.bf16.xpose.msk.msra.mxu1 %vm4008_vm2, %v3497_v55 }
0x10cd   :  { %3509 = vmatprep.subr.msk.bf16.mxu1 %vm4008_vm2, %v3507_v56 }
0x10ce   :  { %v1721_v58 = vpop.permute.xlu1 %1720 }
0x10d3   :  { %3295 = vmatmul.mubr.msk.f32.vlgmr.msra.gmra.mrb[12].mxu1 %vm209_vm1, %v4219_v10 }
0x10d4   :  { %3512 = vmatpush3.bf16.xpose.msk.msra.mxu1 %vm4008_vm2, %v3507_v56  ;;  %3308 = vmatprep.mubr.msk.f32.mxu1 %vm209_vm1, %v1719_v57 }
0x10db   :  { %3309 = vmatmul.mubr.msk.f32.vlgmr.msra.gmra.mrb[14].mxu1 %vm209_vm1, %v1721_v58 }
0x11a6   :  { %v3296_v59 = vpop.f32.mrb[12].mxu1 }
0x11a7   :  { %v1606_v60 = vadd.f32 %v3296_v59, %v4024_v0  ;;  %v1600_v61 = vpop.f32.mrb[13].mxu1 }
0x11a8   :  { %v1601_v62 = vadd.f32 %v1600_v61, %v4026_v1 }
0x11a9   :  { %v1612_v63 = vsel %vm295_vm5, %v1606_v60, -inf }
0x11aa   :  { %1613 = vmax.xlane.f32.xlu1 %v1612_v63  ;;  %v1609_v36 = vsel %vm295_vm5, %v1601_v62, -inf }
0x11ab   :  { %1610 = vmax.xlane.f32.xlu0 %v1609_v36 }
0x11ae   :  { %v3310_v34 = vpop.f32.mrb[14].mxu1 }
0x11af   :  { %v1800_v2 = vpop.f32.mrb[15].mxu1  ;;  %v1806_v4 = vadd.f32 %v3310_v34, %v4024_v0 }
0x11b0   :  { %v1801_v3 = vadd.f32 %v1800_v2, %v4026_v1 }
0x11b1   :  { %v1812_v5 = vsel %vm295_vm5, %v1806_v4, -inf }
0x11b2   :  { %v1809_v42 = vsel %vm295_vm5, %v1801_v3, -inf }
0x11b3   :  { %1810 = vmax.xlane.f32.xlu0 %v1809_v42 }
0x11b7   :  { %1813 = vmax.xlane.f32.xlu0 %v1812_v5 }
0x1237   :  { %v1614_v6 = vpop.xlane.xlu1 %1613 }
0x1238   :  { %v1616_v16 = vsub.f32 %v1606_v60, %v1614_v6  ;;  %v1611_v19 = vpop.xlane.xlu0 %1610 }
0x1239   :  { %v1615_v7 = vsub.f32 %v1601_v62, %v1611_v19 }
0x123a   :  { %v1619_v8 = vmul.f32 1.442695, %v1616_v16 }
0x123b   :  { %v1617_v11 = vmul.f32 1.442695, %v1615_v7 }
0x123c   :  { %3761 = vpow2.f32 %v1619_v8 }
0x123d   :  { %3763 = vpow2.f32 %v1617_v11 }
0x1240   :  { %v1811_v12 = vpop.xlane.xlu0 %1810 }
0x1241   :  { %v1815_v13 = vsub.f32 %v1801_v3, %v1811_v12 }
0x1243   :  { %v1817_v18 = vmul.f32 1.442695, %v1815_v13 }
0x1244   :  { %v1814_v22 = vpop.xlane.xlu0 %1813 }
0x1245   :  { %3765 = vpow2.f32 %v1817_v18  ;;  %v1816_v25 = vsub.f32 %v1806_v4, %v1814_v22 }
0x1246   :  { %v3762_v26 = vpop.eup %3761 }
0x1247   :  { %v3764_v27 = vpop.eup %3763  ;;  %v1819_v28 = vmul.f32 1.442695, %v1816_v25  ;;  %v1624_v29 = vsel %vm295_vm5, %v3762_v26, 0.0 }
0x1248   :  { %1625 = vadd.xlane.f32.xlu1 %v1624_v29  ;;  %v1621_v14 = vsel %vm295_vm5, %v3764_v27, 0.0 }
0x1249   :  { %3767 = vpow2.f32 %v1819_v28  ;;  %1622 = vadd.xlane.f32.xlu0 %v1621_v14 }
0x124f   :  { %v3766_v15 = vpop.eup %3765 }
0x1250   :  { %v1821_v17 = vsel %vm295_vm5, %v3766_v15, 0.0 }
0x1251   :  { %1822 = vadd.xlane.f32.xlu0 %v1821_v17 }
0x1253   :  { %v3768_v30 = vpop.eup %3767 }
0x1254   :  { %v1824_v31 = vsel %vm295_vm5, %v3768_v30, 0.0 }
0x1255   :  { %1825 = vadd.xlane.f32.xlu1 %v1824_v31 }
0x1266   :  { %3669 = vrot.lane.b32.xlu1 %v4207_v47, %s3886_s24 }
0x1267   :  { %3664 = vrot.lane.b32.xlu0 %v4207_v47, %s3887_s25 }
0x126a   :  { %3674 = vrot.lane.b32.xlu1 %v4207_v47, %s3888_s27 }
0x126b   :  { %1920 = vrot.lane.b32.xlu0 %v4219_v10, %s3889_s28 }
0x126e   :  { %1918 = vrot.lane.b32.xlu1 %v4209_v48, %s3889_s28 }
0x12d5   :  { %v1626_v33 = vpop.xlane.xlu1 %1625 }
0x12d6   :  { %v1623_v32 = vpop.xlane.xlu0 %1622 }
0x12d7   :  { %3769 = vrcp.f32 %v1623_v32 }
0x12d8   :  { %3771 = vrcp.f32 %v1626_v33 }
0x12de   :  { %v1823_v35 = vpop.xlane.xlu0 %1822 }
0x12df   :  { %3773 = vrcp.f32 %v1823_v35 }
0x12e1   :  { %v3770_v43 = vpop.eup %3769 }
0x12e2   :  { %v1826_v37 = vpop.xlane.xlu1 %1825  ;;  %v3665_v39 = vpop.permute.xlu0 %3664  ;;  %v1629_v40 = vmul.f32 %v3770_v43, %v3764_v27 }
0x12e3   :  { %3775 = vrcp.f32 %v1826_v37  ;;  %v3667_v41 = vunpack.i.h.bf16 %v3665_v39  ;;  %v3666_v45 = vunpack.i.l.bf16 %v3665_v39  ;;  %v3772_v49 = vpop.eup %3771 }
0x12e4   :  { %3301 = vmatprep.mubr.msk.f32.mxu0 %vm295_vm5, %v1629_v40  ;;  %v1630_v54 = vmul.f32 %v3772_v49, %v3762_v26 }
0x12e5   :  { %v3503_v46 = vpack.c.bf16 %v3667_v41, %v3666_v45 }
0x12e6   :  { %v3670_v50 = vpop.permute.xlu1 %3669  ;;  %v1921_v36 = vpop.permute.xlu0 %1920 }
0x12e7   :  { %v3672_v9 = vunpack.i.h.bf16 %v3670_v50  ;;  %v3671_v52 = vunpack.i.l.bf16 %v3670_v50  ;;  %3504 = vmatprep.subr.bf16.mxu0 %v3503_v46 }
0x12e8   :  { %3506 = vmatpush3.bf16.msra.mxu0 %v3503_v46 }
0x12e9   :  { %v3774_v53 = vpop.eup %3773  ;;  %v3513_v55 = vpack.c.bf16 %v3672_v9, %v3671_v52 }
0x12ea   :  { %v3675_v56 = vpop.permute.xlu1 %3674  ;;  %v1829_v57 = vmul.f32 %v3774_v53, %v3766_v15 }
0x12eb   :  { %v3677_v58 = vunpack.i.h.bf16 %v3675_v56  ;;  %v3676_v59 = vunpack.i.l.bf16 %v3675_v56  ;;  %3302 = vmatmul.mubr.msk.f32.vlgmr.msra.gmra.mrb[14].mxu0 %vm295_vm5, %v1630_v54  ;;  %3514 = vmatprep.subr.bf16.mxu0 %v3513_v55 }
0x12ec   :  { %3516 = vmatpush3.bf16.msra.mxu0 %v3513_v55  ;;  %3315 = vmatprep.mubr.msk.f32.mxu0 %vm295_vm5, %v1829_v57 }
0x12ed   :  { %v3776_v60 = vpop.eup %3775  ;;  %v3517_v61 = vpack.c.bf16 %v3677_v58, %v3676_v59 }
0x12ee   :  { %v1830_v62 = vmul.f32 %v3776_v60, %v3768_v30  ;;  %v1919_v63 = vpop.permute.xlu1 %1918 }
0x12ef   :  { %3519 = vmatprep.subr.msk.bf16.mxu0 %vm4008_vm2, %v3517_v61 }
0x12f0   :  { %3316 = vmatmul.mubr.msk.f32.vlgmr.msra.gmra.mrb[16].mxu0 %vm295_vm5, %v1830_v62 }
0x12f1   :  { %3322 = vmatprep.mubr.msk.f32.mxu0 %vm209_vm1, %v1919_v63 }
0x12f5   :  { %3522 = vmatpush3.bf16.xpose.msk.msra.mxu0 %vm4008_vm2, %v3517_v61 }
0x12fc   :  { %3323 = vmatmul.mubr.msk.f32.vlgmr.msra.gmra.mrb[18].mxu0 %vm209_vm1, %v1921_v36  ;;  %v3693_v36 = vpack.i.bf16 %v4183_v21, %v4178_v20 }
0x13be   :  { %v4267_v34 = vpop.f32.mrb[14].mxu0 }
0x13bf   :  { %v4269_v2 = vpop.f32.mrb[15].mxu0 }
0x13c3   :  { %v4271_v3 = vpop.f32.mrb[16].mxu0 }
0x13c4   :  { %v4273_v4 = vpop.f32.mrb[17].mxu0 }
0x13cf   :  { %v3324_v42 = vpop.f32.mrb[18].mxu0 }
0x13d0   :  { %v2006_v5 = vadd.f32 %v3324_v42, %v4024_v0  ;;  %v2000_v6 = vpop.f32.mrb[19].mxu0 }
0x13d1   :  { %v2001_v16 = vadd.f32 %v2000_v6, %v4026_v1 }
0x13d2   :  { %v2012_v19 = vsel %vm295_vm5, %v2006_v5, -inf }
0x13d3   :  { %2013 = vmax.xlane.f32.xlu0 %v2012_v19  ;;  %v2009_v7 = vsel %vm295_vm5, %v2001_v16, -inf }
0x13d4   :  { %2010 = vmax.xlane.f32.xlu1 %v2009_v7 }
0x13e5   :  { %3679 = vrot.lane.b32.xlu1 %v4207_v47, %s3890_s29 }
0x13e9   :  { %2118 = vrot.lane.b32.xlu1 %v4209_v48, %s3891_s30 }
0x13ed   :  { %2120 = vrot.lane.b32.xlu1 %v4219_v10, %s3891_s30 }
0x1460   :  { %v2014_v8 = vpop.xlane.xlu0 %2013 }
0x1461   :  { %v2016_v11 = vsub.f32 %v2006_v5, %v2014_v8  ;;  %v2011_v12 = vpop.xlane.xlu1 %2010 }
0x1462   :  { %v2015_v13 = vsub.f32 %v2001_v16, %v2011_v12 }
0x1463   :  { %v2019_v18 = vmul.f32 1.442695, %v2016_v11 }
0x1464   :  { %v2017_v22 = vmul.f32 1.442695, %v2015_v13 }
0x1465   :  { %3777 = vpow2.f32 %v2019_v18  ;;  %v3680_v25 = vpop.permute.xlu1 %3679 }
0x1466   :  { %v3682_v26 = vunpack.i.h.bf16 %v3680_v25  ;;  %v3681_v27 = vunpack.i.l.bf16 %v3680_v25  ;;  %3779 = vpow2.f32 %v2017_v22 }
0x1468   :  { %v3523_v28 = vpack.c.bf16 %v3682_v26, %v3681_v27 }
0x1469   :  { %v2119_v40 = vpop.permute.xlu1 %2118 }
0x146a   :  { %3524 = vmatprep.subr.bf16.mxu1 %v3523_v28 }
0x146b   :  { %3526 = vmatpush3.bf16.msra.mxu1 %v3523_v28 }
0x146d   :  { %v2121_v41 = vpop.permute.xlu1 %2120 }
0x146f   :  { %v3778_v29 = vpop.eup %3777 }
0x1470   :  { %v2024_v48 = vsel %vm295_vm5, %v3778_v29, 0.0  ;;  %v3780_v14 = vpop.eup %3779 }
0x1471   :  { %2025 = vadd.xlane.f32.xlu0 %v2024_v48  ;;  %v2021_v10 = vsel %vm295_vm5, %v3780_v14, 0.0 }
0x1475   :  { %2022 = vadd.xlane.f32.xlu0 %v2021_v10 }
0x148b   :  { %3684 = vrot.lane.b32.xlu0 %v4207_v47, %s3892_s5 }
0x14fe   :  { %v2026_v15 = vpop.xlane.xlu0 %2025 }
0x14ff   :  { %3781 = vrcp.f32 %v2026_v15 }
0x1502   :  { %v2023_v17 = vpop.xlane.xlu0 %2022 }
0x1503   :  { %3783 = vrcp.f32 %v2023_v17 }
0x1506   :  { %v3685_v30 = vpop.permute.xlu0 %3684 }
0x1507   :  { %v3687_v31 = vunpack.i.h.bf16 %v3685_v30  ;;  %v3686_v32 = vunpack.i.l.bf16 %v3685_v30 }
0x1509   :  { %v3527_v33 = vpack.c.bf16 %v3687_v31, %v3686_v32  ;;  %v3782_v35 = vpop.eup %3781  ;;  %v3012_v32 = vld [vmem:[#allocation5 + $0xb] ss:$0 sm:$0xff] }
0x150a   :  { %v2030_v39 = vmul.f32 %v3782_v35, %v3778_v29 }
0x150b   :  { %3529 = vmatprep.subr.msk.bf16.mxu1 %vm4008_vm2, %v3527_v33 }
0x150d   :  { %v3784_v43 = vpop.eup %3783 }
0x150e   :  { %v2029_v37 = vmul.f32 %v3784_v43, %v3780_v14 }
0x1510   :  { %3329 = vmatprep.mubr.msk.f32.mxu1 %vm295_vm5, %v2029_v37 }
0x1511   :  { %3330 = vmatmul.mubr.msk.f32.vlgmr.msra.gmra.mrb[16].mxu1 %vm295_vm5, %v2030_v39 }
0x1512   :  { %3532 = vmatpush3.bf16.xpose.msk.msra.mxu1 %vm4008_vm2, %v3527_v33  ;;  %3336 = vmatprep.mubr.msk.f32.mxu1 %vm209_vm1, %v2119_v40 }
0x1519   :  { %3337 = vmatmul.mubr.msk.f32.vlgmr.msra.gmra.mrb[18].mxu1 %vm209_vm1, %v2121_v41 }
0x15e4   :  { %v3331_v45 = vpop.f32.mrb[16].mxu1 }
0x15e5   :  { %v2109_v46 = vpop.f32.mrb[17].mxu1 }
0x15ec   :  { %v3338_v49 = vpop.f32.mrb[18].mxu1 }
0x15ed   :  { %v2206_v50 = vadd.f32 %v3338_v49, %v4024_v0  ;;  %v2200_v9 = vpop.f32.mrb[19].mxu1 }
0x15ee   :  { %v2201_v52 = vadd.f32 %v2200_v9, %v4026_v1 }
0x15ef   :  { %v2212_v53 = vsel %vm295_vm5, %v2206_v50, -inf }
0x15f0   :  { %2213 = vmax.xlane.f32.xlu0 %v2212_v53  ;;  %v2209_v54 = vsel %vm295_vm5, %v2201_v52, -inf }
0x15f1   :  { %2210 = vmax.xlane.f32.xlu1 %v2209_v54 }
0x1602   :  { %3689 = vrot.lane.b32.xlu1 %v4207_v47, %s3893_s6 }
0x1606   :  { %3699 = vrot.lane.b32.xlu1 %v3698_v51, %s3894_s7  ;;  %v2980_v51 = vld [vmem:[%s4412_s1 + $0x58] sm:$0xff] }
0x160a   :  { %2320 = vrot.lane.b32.xlu1 %v4273_v4, %s3881_s26 }
0x160e   :  { %2322 = vrot.lane.b32.xlu1 %v4271_v3, %s3881_s26 }
0x1612   :  { %2330 = vrot.lane.b32.xlu1 %v3331_v45, %s3895_s8 }
0x167d   :  { %v2214_v0 = vpop.xlane.xlu0 %2213 }
0x167e   :  { %v2216_v1 = vsub.f32 %v2206_v50, %v2214_v0  ;;  %v2211_v55 = vpop.xlane.xlu1 %2210 }
0x167f   :  { %v2215_v56 = vsub.f32 %v2201_v52, %v2211_v55  ;;  %v2984_v55 = vld [vmem:[%s4412_s1 + $0x78] sm:$0xff] }
0x1680   :  { %v2219_v57 = vmul.f32 1.442695, %v2216_v1  ;;  %v2982_v1 = vld [vmem:[%s4412_s1 + $0x68] sm:$0xff] }
0x1681   :  { %v2217_v58 = vmul.f32 1.442695, %v2215_v56  ;;  %v3549_v56 = vpack.c.bf16 %v2984_v55, %v2982_v1 }
0x1682   :  { %v3690_v47 = vpop.permute.xlu1 %3689 }
0x1683   :  { %3785 = vpow2.f32 %v2217_v58  ;;  %v3692_v59 = vunpack.i.h.bf16 %v3690_v47  ;;  %v3691_v23 = vunpack.i.l.bf16 %v3690_v47 }
0x1684   :  { %3787 = vpow2.f32 %v2219_v57 }
0x1685   :  { %v3533_v24 = vpack.c.bf16 %v3692_v59, %v3691_v23 }
0x1686   :  { %v3700_v19 = vpop.permute.xlu1 %3699 }
0x1687   :  { %3534 = vmatprep.subr.bf16.mxu0 %v3533_v24  ;;  %v3702_v8 = vunpack.i.h.bf16 %v3700_v19  ;;  %v3701_v11 = vunpack.i.l.bf16 %v3700_v19  ;;  %v3021_v19 = vld [vmem:[%s4413_s2 + $0x48] sm:$0xff] }
0x1688   :  { %3536 = vmatpush3.bf16.msra.mxu0 %v3533_v24 }
0x1689   :  { %v3541_v21 = vpack.c.bf16 %v3702_v8, %v3701_v11  ;;  %v3022_v8 = vld [vmem:[%s4413_s2 + $0x50] sm:$0xff]  ;;  %v3023_v11 = vld [vmem:[%s4413_s2 + $0x58] sm:$0xff] }
0x168a   :  { %v2321_v25 = vpop.permute.xlu1 %2320 }
0x168b   :  { %v2342_v29 = vsel %vm209_vm1, %v4269_v2, %v2321_v25 }
0x168d   :  { %v3786_v60 = vpop.eup %3785 }
0x168e   :  { %v2221_v61 = vsel %vm295_vm5, %v3786_v60, 0.0  ;;  %v3788_v62 = vpop.eup %3787  ;;  %v2323_v26 = vpop.permute.xlu1 %2322 }
0x168f   :  { %2222 = vadd.xlane.f32.xlu0 %v2221_v61  ;;  %v2224_v63 = vsel %vm295_vm5, %v3788_v62, 0.0  ;;  %v2343_v14 = vsel %vm209_vm1, %v4267_v34, %v2323_v26  ;;  %v3015_v61 = vld [vmem:[#allocation5 + $0xc] ss:$0 sm:$0xff]  ;;  %v3017_v26 = vld [vmem:[#allocation5 + $0xe] ss:$0 sm:$0xff] }
0x1692   :  { %v2331_v27 = vpop.permute.xlu1 %2330 }
0x1693   :  { %2225 = vadd.xlane.f32.xlu0 %v2224_v63  ;;  %v2345_v17 = vsel %vm295_vm5, %v2343_v14, %v2331_v27  ;;  %v3016_v63 = vld [vmem:[#allocation5 + $0xd] ss:$0 sm:$0xff] }
0x16a9   :  { %3694 = vrot.lane.b32.xlu0 %v3693_v36, %s3894_s7 }
0x16ad   :  { %2328 = vrot.lane.b32.xlu0 %v2109_v46, %s3895_s8 }
0x171c   :  { %v2223_v3 = vpop.xlane.xlu0 %2222 }
0x171d   :  { %3789 = vrcp.f32 %v2223_v3 }
0x1720   :  { %v2226_v4 = vpop.xlane.xlu0 %2225 }
0x1721   :  { %3791 = vrcp.f32 %v2226_v4 }
0x1724   :  { %v3695_v42 = vpop.permute.xlu0 %3694 }
0x1725   :  { %v3697_v5 = vunpack.i.h.bf16 %v3695_v42  ;;  %v3696_v6 = vunpack.i.l.bf16 %v3695_v42 }
0x1727   :  { %v3790_v16 = vpop.eup %3789  ;;  %v3537_v7 = vpack.c.bf16 %v3697_v5, %v3696_v6 }
0x1728   :  { %v2229_v12 = vmul.f32 %v3790_v16, %v3786_v60  ;;  %v2329_v28 = vpop.permute.xlu0 %2328  ;;  %v3020_v16 = vld [vmem:[%s4413_s2 + $0x40] sm:$0xff] }
0x1729   :  { %3538 = vmatprep.subr.bf16.mxu0 %v3537_v7  ;;  %v2344_v10 = vsel %vm295_vm5, %v2342_v29, %v2329_v28 }
0x172a   :  { %3343 = vmatprep.mubr.msk.f32.mxu0 %vm295_vm5, %v2229_v12  ;;  %v3557_v12 = vpack.c.bf16 %v3023_v11, %v3022_v8 }
0x172b   :  { %v3792_v20 = vpop.eup %3791 }
0x172c   :  { %v2230_v13 = vmul.f32 %v3792_v20, %v3788_v62  ;;  %v3024_v20 = vld [vmem:[%s4413_s2 + $0x60] sm:$0xff] }
0x172e   :  { %3344 = vmatmul.mubr.msk.f32.vlgmr.msra.gmra.mrb[20].mxu0 %vm295_vm5, %v2230_v13 }
0x172f   :  { %3540 = vmatpush3.bf16.msra.mxu0 %v3537_v7  ;;  %v3553_v7 = vpack.c.bf16 %v3021_v19, %v3020_v16 }
0x1730   :  { %3542 = vmatprep.subr.bf16.mxu0 %v3541_v21 }
0x1733   :  { %3544 = vmatpush3.bf16.msra.mxu0 %v3541_v21  ;;  %v3025_v21 = vld [vmem:[%s4413_s2 + $0x68] sm:$0xff] }
0x1734   :  { %3554 = vmatprep.subr.bf16.mxu0 %v3553_v7  ;;  %v3561_v13 = vpack.c.bf16 %v3025_v21, %v3024_v20  ;;  %v3031_v21 = vld [vmem:[#allocation5 + $0x10] ss:$0 sm:$0xff] }
0x1801   :  { %v3345_v18 = vpop.f32.mrb[20].mxu0 }
0x1802   :  { %2338 = vrot.lane.b32.xlu1 %v3345_v18, %s3896_s9  ;;  %v2309_v22 = vpop.f32.mrb[21].mxu0  ;;  %v3026_v18 = vld [vmem:[%s4413_s2 + $0x70] sm:$0xff] }
0x1803   :  { %2336 = vrot.lane.b32.xlu0 %v2309_v22, %s3896_s9  ;;  %v3027_v22 = vld [vmem:[%s4413_s2 + $0x78] sm:$0xff] }
0x1804   :  { %v3565_v25 = vpack.c.bf16 %v3027_v22, %v3026_v18 }
0x1874   :  { %v2339_v48 = vpop.permute.xlu1 %2338 }
0x1875   :  { %v2337_v15 = vpop.permute.xlu0 %2336  ;;  %v2347_v31 = vsel %vm1033_vm6, %v2345_v17, %v2339_v48 }
0x1876   :  { %v2346_v30 = vsel %vm1033_vm6, %v2344_v10, %v2337_v15 }
0x1877   :  { %3354 = vmatprep.mubr.msk.f32.mxu0 %vm67_vm0, %v2346_v30 }
0x1878   :  { %3355 = vmatmul.mubr.msk.f32.vlgmr.msra.gmra.mrb[22].mxu0 %vm67_vm0, %v2347_v31 }
0x1879   :  { %3556 = vmatpush3.bf16.msra.mxu0 %v3553_v7 }
0x187a   :  { %3558 = vmatprep.subr.bf16.mxu0 %v3557_v12 }
0x187d   :  { %3560 = vmatpush3.bf16.msra.mxu0 %v3557_v12 }
0x187e   :  { %3562 = vmatprep.subr.bf16.mxu0 %v3561_v13 }
0x1881   :  { %3564 = vmatpush3.bf16.msra.mxu0 %v3561_v13 }
0x1882   :  { %3566 = vmatprep.subr.bf16.mxu0 %v3565_v25 }
0x1885   :  { %3568 = vmatpush3.bf16.msra.mxu0 %v3565_v25  ;;  %v3032_v25 = vld [vmem:[#allocation5 + $0x11] ss:$0 sm:$0xff] }
0x194b   :  { %v3356_v33 = vpop.f32.mrb[22].mxu0 }
0x194c   :  { %v2447_v2 = vadd.f32 %v3356_v33, %v3012_v32  ;;  %v2441_v35 = vpop.f32.mrb[23].mxu0 }
0x194d   :  { %v2442_v43 = vadd.f32 %v3012_v32, %v2441_v35 }
0x194e   :  { %v2451_v34 = vadd.f32 %v2447_v2, %v4201_v38 }
0x194f   :  { %v2450_v37 = vadd.f32 %v2442_v43, %v4199_v44  ;;  %v2978_v44 = vld [vmem:[%s4412_s1 + $0x48] sm:$0xff] }
0x1950   :  { %v2457_v39 = vsel %vm67_vm0, %v2451_v34, 0.0  ;;  %v3545_v0 = vpack.c.bf16 %v2980_v51, %v2978_v44 }
0x1951   :  { %2458 = vadd.xlane.f32.xlu1 %v2457_v39  ;;  %v2454_v40 = vsel %vm67_vm0, %v2450_v37, 0.0 }
0x1952   :  { %2455 = vadd.xlane.f32.xlu0 %v2454_v40  ;;  %3546 = vmatprep.subr.bf16.mxu1 %v3545_v0 }
0x1953   :  { %3548 = vmatpush3.bf16.msra.mxu1 %v3545_v0 }
0x1954   :  { %3550 = vmatprep.subr.bf16.mxu1 %v3549_v56 }
0x1957   :  { %3552 = vmatpush3.bf16.msra.mxu1 %v3549_v56 }
0x19de   :  { %v2459_v41 = vpop.xlane.xlu1 %2458 }
0x19df   :  { %v2461_v45 = vmul.f32 0.03125, %v2459_v41  ;;  %v2456_v46 = vpop.xlane.xlu0 %2455 }
0x19e0   :  { %v2460_v49 = vmul.f32 0.03125, %v2456_v46 }
0x19e1   :  { %v2463_v50 = vsub.f32 %v2451_v34, %v2461_v45 }
0x19e2   :  { %v2462_v9 = vsub.f32 %v2450_v37, %v2460_v49  ;;  %v3028_v49 = vld [vmem:[#allocation5 + $0xf] ss:$0 sm:$0xff] }
0x19e3   :  { %v2465_v54 = vmul.f32 %v2463_v50, %v2463_v50 }
0x19e4   :  { %v2464_v52 = vmul.f32 %v2462_v9, %v2462_v9 }
0x19e5   :  { %v2469_v38 = vsel %vm67_vm0, %v2465_v54, 0.0 }
0x19e6   :  { %v2466_v53 = vsel %vm67_vm0, %v2464_v52, 0.0 }
0x19e7   :  { %2467 = vadd.xlane.f32.xlu0 %v2466_v53 }
0x19eb   :  { %2470 = vadd.xlane.f32.xlu0 %v2469_v38 }
0x1a74   :  { %v2468_v57 = vpop.xlane.xlu0 %2467 }
0x1a75   :  { %v2472_v58 = vmul.f32 0.03125, %v2468_v57 }
0x1a77   :  { %v2474_v47 = vadd.f32 1e-12, %v2472_v58 }
0x1a78   :  { %v2471_v59 = vpop.xlane.xlu0 %2470 }
0x1a79   :  { %3793 = vrsqrt.f32 %v2474_v47  ;;  %v2473_v23 = vmul.f32 0.03125, %v2471_v59 }
0x1a7b   :  { %v2475_v24 = vadd.f32 1e-12, %v2473_v23 }
0x1a7d   :  { %3795 = vrsqrt.f32 %v2475_v24 }
0x1a83   :  { %v3794_v60 = vpop.eup %3793 }
0x1a84   :  { %v2478_v62 = vmul.f32 %v3794_v60, %v2462_v9  ;;  %v3033_v60 = vld [vmem:[%s4412_s1 + $0x80] sm:$0xff] }
0x1a86   :  { %v2484_v36 = vmul.f32 %v3015_v61, %v2478_v62 }
0x1a87   :  { %v3796_v3 = vpop.eup %3795 }
0x1a88   :  { %v2479_v4 = vmul.f32 %v3796_v3, %v2463_v50  ;;  %v2490_v42 = vadd.f32 %v3016_v63, %v2484_v36  ;;  %v3036_v36 = vld [vmem:[%s4412_s1 + $0xb0] sm:$0xff]  ;;  %v3897_v3 = vmov 0.0|0.0  }
0x1a89   :  { %3569 = vmatprep.subr.bf16.mxu1 %v3897_v3 }
0x1a8a   :  { %v2485_v5 = vmul.f32 %v3015_v61, %v2479_v4  ;;  %3365 = vmatprep.mubr.msk.f32.mxu1 %vm67_vm0, %v2490_v42  ;;  %v3034_v61 = vld [vmem:[%s4412_s1 + $0x90] sm:$0xff]  ;;  %v3899_v4 = vmov 0.0  }
0x1a8b   :  { %v3570_v62 = vpack.c.bf16 %v3034_v61, %v3033_v60 }
0x1a8c   :  { %v2491_v6 = vadd.f32 %v3016_v63, %v2485_v5  ;;  %v3035_v63 = vld [vmem:[%s4412_s1 + $0xa0] sm:$0xff]  ;;  %v3703_v5 = vpack.i.bf16 %v3034_v61, %v3033_v60  ;;  %s3900_s1 = smov [#allocation7]  }
0x1a8e   :  { %3366 = vmatmul.mubr.msk.f32.vlgmr.msra.gmra.mrb[20].mxu1 %vm67_vm0, %v2491_v6 }
0x1a8f   :  { %3395 = vmatprep.mubr.msk.f32.mxu1 %vm3898_vm8, %v3899_v4  ;;  %3571 = vmatpush3.bf16.msra.mxu1 %v3570_v62 }
0x1a90   :  { %3572 = vmatprep.subr.bf16.mxu1 %v3897_v3 }
0x1b61   :  { %v3367_v27 = vpop.f32.mrb[20].mxu1 }
0x1b62   :  { %v2575_v28 = vadd.f32 %v3367_v27, %v3017_v26  ;;  %v2569_v29 = vpop.f32.mrb[21].mxu1 }
0x1b63   :  { %v2570_v48 = vadd.f32 %v3017_v26, %v2569_v29 }
0x1b64   :  { %v2581_v14 = vmul.f32 0.044715, %v2575_v28  ;;  %v2579_v41 = vmul.f32 0.5, %v2575_v28 }
0x1b65   :  { %v2580_v10 = vmul.f32 0.044715, %v2570_v48  ;;  %v2578_v39 = vmul.f32 0.5, %v2570_v48 }
0x1b66   :  { %v2583_v15 = vmul.f32 %v2581_v14, %v2575_v28 }
0x1b67   :  { %v2582_v17 = vmul.f32 %v2580_v10, %v2570_v48 }
0x1b68   :  { %v2585_v30 = vmul.f32 %v2583_v15, %v2575_v28 }
0x1b69   :  { %v2584_v31 = vmul.f32 %v2582_v17, %v2570_v48 }
0x1b6a   :  { %v2587_v32 = vadd.f32 %v2585_v30, %v2575_v28 }
0x1b6b   :  { %v2586_v33 = vadd.f32 %v2584_v31, %v2570_v48 }
0x1b6c   :  { %v2589_v2 = vmul.f32 0.7978846, %v2587_v32 }
0x1b6d   :  { %v2588_v35 = vmul.f32 0.7978846, %v2586_v33 }
0x1b6e   :  { %3797 = vtanh.f32 %v2589_v2 }
0x1b6f   :  { %3799 = vtanh.f32 %v2588_v35  ;;  %v3037_v35 = vld [vmem:[#allocation5 + $0x12] ss:$0 sm:$0xff] }
0x1b78   :  { %v3798_v43 = vpop.eup %3797 }
0x1b79   :  { %v3800_v34 = vpop.eup %3799  ;;  %v2593_v37 = vadd.f32 1.0, %v3798_v43 }
0x1b7a   :  { %v2592_v40 = vadd.f32 1.0, %v3800_v34 }
0x1b7b   :  { %v2595_v46 = vmul.f32 %v2593_v37, %v2579_v41 }
0x1b7c   :  { %v2594_v45 = vmul.f32 %v2592_v40, %v2578_v39  ;;  %v3039_v40 = vld [vmem:[#allocation5 + $0x13] ss:$0 sm:$0xff] }
0x1b7e   :  { %3384 = vmatprep.mubr.msk.f32.mxu0 %vm1297_vm7, %v2594_v45 }
0x1b7f   :  { %3385 = vmatmul.mubr.msk.f32.vlgmr.msra.gmra.mrb[24].mxu0 %vm1297_vm7, %v2595_v46 }
0x1c52   :  { %v3386_v50 = vpop.f32.mrb[24].mxu0 }
0x1c53   :  { %v2688_v9 = vadd.f32 %v3386_v50, %v3028_v49  ;;  %v2682_v52 = vpop.f32.mrb[25].mxu0 }
0x1c54   :  { %v2683_v53 = vadd.f32 %v3028_v49, %v2682_v52 }
0x1c55   :  { %v2692_v54 = vadd.f32 %v2688_v9, %v2491_v6  ;;  %v3708_v6 = vpack.i.bf16 %v3036_v36, %v3035_v63 }
0x1c56   :  { %v2691_v38 = vadd.f32 %v2683_v53, %v2490_v42  ;;  %v3573_v42 = vpack.c.bf16 %v3036_v36, %v3035_v63 }
0x1c57   :  { %v2698_v44 = vsel %vm67_vm0, %v2692_v54, 0.0 }
0x1c58   :  { %2699 = vadd.xlane.f32.xlu0 %v2698_v44  ;;  %v2695_v51 = vsel %vm67_vm0, %v2691_v38, 0.0  ;;  %3574 = vmatpush3.bf16.msra.mxu1 %v3573_v42 }
0x1c59   :  { %2696 = vadd.xlane.f32.xlu1 %v2695_v51  ;;  %3575 = vmatprep.subr.bf16.mxu1 %v3897_v3 }
0x1ce5   :  { %v2700_v0 = vpop.xlane.xlu0 %2699 }
0x1ce6   :  { %v2702_v1 = vmul.f32 0.03125, %v2700_v0  ;;  %v2697_v55 = vpop.xlane.xlu1 %2696 }
0x1ce7   :  { %v2701_v56 = vmul.f32 0.03125, %v2697_v55 }
0x1ce8   :  { %v2704_v57 = vsub.f32 %v2692_v54, %v2702_v1 }
0x1ce9   :  { %v2703_v58 = vsub.f32 %v2691_v38, %v2701_v56 }
0x1cea   :  { %v2706_v47 = vmul.f32 %v2704_v57, %v2704_v57 }
0x1ceb   :  { %v2705_v59 = vmul.f32 %v2703_v58, %v2703_v58 }
0x1cec   :  { %v2710_v23 = vsel %vm67_vm0, %v2706_v47, 0.0 }
0x1ced   :  { %2711 = vadd.xlane.f32.xlu0 %v2710_v23  ;;  %v2707_v24 = vsel %vm67_vm0, %v2705_v59, 0.0 }
0x1cee   :  { %2708 = vadd.xlane.f32.xlu1 %v2707_v24 }
0x1cff   :  { %3709 = vrot.lane.b32.xlu1 %v3708_v6, %s3884_s22 }
0x1d03   :  { %3704 = vrot.lane.b32.xlu0 %v3703_v5, %s3884_s22  ;;  %s2924_s22 = sshll.u32 %s3900_s1, 4  ;;  %s2925_s22 = int_to_ptr.vmem [resolvable:$true] %s2924_s22 }
0x1d04   :  { %s3851_s25 = scalar_lea.vmem %s2925_s22, 32  ;;  %p3856_p3 = scmp.lt.s32.totalorder %s2925_s22, %s2925_s22 }
0x1d05   :  { %p3852_p2 = scmp.ne.s32.totalorder %s2925_s22, %s3851_s25  ;;  %p3857_p4 = scmp.lt.s32.totalorder %s3851_s25, %s3851_s25 }
0x1d07   :  { %p3858_p5 = por %p3857_p4, %p3856_p3 }
0x1d09   :  { %p3859_p6 = pnand %p3858_p5, %p3852_p2 }
0x1d7a   :  { %v2712_v16 = vpop.xlane.xlu0 %2711 }
0x1d7b   :  { %v2714_v19 = vmul.f32 0.03125, %v2712_v16  ;;  %v2709_v7 = vpop.xlane.xlu1 %2708 }
0x1d7c   :  { %v2713_v8 = vmul.f32 0.03125, %v2709_v7 }
0x1d7d   :  { %v2716_v11 = vadd.f32 1e-12, %v2714_v19 }
0x1d7e   :  { %v2715_v12 = vadd.f32 1e-12, %v2713_v8  ;;  %v3705_v10 = vpop.permute.xlu0 %3704 }
0x1d7f   :  { %3801 = vrsqrt.f32 %v2716_v11  ;;  %v3710_v15 = vpop.permute.xlu1 %3709  ;;  %v3707_v17 = vunpack.i.h.bf16 %v3705_v10  ;;  %v3706_v30 = vunpack.i.l.bf16 %v3705_v10 }
0x1d80   :  { %3803 = vrsqrt.f32 %v2715_v12  ;;  %v3712_v31 = vunpack.i.h.bf16 %v3710_v15  ;;  %v3711_v32 = vunpack.i.l.bf16 %v3710_v15 }
0x1d81   :  { %v3576_v33 = vpack.c.bf16 %v3707_v17, %v3706_v30 }
0x1d82   :  { %v3579_v2 = vpack.c.bf16 %v3712_v31, %v3711_v32 }
0x1d89   :  { %v3802_v20 = vpop.eup %3801 }
0x1d8a   :  { %v3804_v13 = vpop.eup %3803  ;;  %v2720_v18 = vmul.f32 %v3802_v20, %v2704_v57 }
0x1d8b   :  { %v2719_v22 = vmul.f32 %v3804_v13, %v2703_v58 }
0x1d8c   :  { %v2726_v26 = vmul.f32 %v3031_v21, %v2720_v18 }
0x1d8d   :  { %v2725_v27 = vmul.f32 %v3031_v21, %v2719_v22 }
0x1d8e   :  { %v2732_v28 = vadd.f32 %v3032_v25, %v2726_v26 }
0x1d8f   :  { %v2731_v29 = vadd.f32 %v3032_v25, %v2725_v27 }
0x1d90   :  { %v2734_v48 = vrot.slane %v2732_v28, 7 }
0x1d92   :  { %v2737_v14 = vsel %vm2736_vm9, %v2731_v29, %v2734_v48 }
0x1d93   :  { %3396 = vmatmul.mubr.msk.f32.vlgmr.msra.gmra.mrb[22].mxu1 %vm67_vm0, %v2737_v14 }
0x1d94   :  { %3406 = vmatprep.mubr.msk.f32.mxu1 %vm3898_vm8, %v3899_v4  ;;  %3577 = vmatpush3.bf16.msra.mxu1 %v3576_v33 }
0x1d95   :  { %3578 = vmatprep.subr.bf16.mxu1 %v3897_v3 }
0x1d98   :  { %3580 = vmatpush3.bf16.msra.mxu1 %v3579_v2 }
0x1e66   :  { %v2817_v43 = vpop.f32.mrb[22].mxu1 }
0x1e67   :  { %v2818_v34 = vadd.f32 %v3037_v35, %v2817_v43  ;;  %v3397_v37 = vpop.f32.mrb[23].mxu1 }
0x1e69   :  { %3805 = vtanh.f32 %v2818_v34 }
0x1e73   :  { %v3806_v39 = vpop.eup %3805 }
0x1e74   :  { %3407 = vmatmul.mubr.msk.f32.vlgmr.msra.gmra.mrb[24].mxu1 %vm67_vm0, %v3806_v39 }
0x1f47   :  { %v2912_v41 = vpop.f32.mrb[24].mxu1 }
0x1f48   :  { %v2913_v45 = vadd.f32 %v3039_v40, %v2912_v41  ;;  %v3408_v46 = vpop.f32.mrb[25].mxu1 }
0x1f4a   :  { %2917 = vst.msk [vmem:[#allocation7] sm:$0x3] %vm2916_vm10, %v2913_v45 }
0x1f4b   :  { %3862 = shalt.err (!%p3859_p6)
}
0x1f4c   :  { %s3863_s29 = scalar_lea.hbm %s4415_s4, 32 }
0x1f4d   :  { %p3864_p7 = scmp.ne.s32.totalorder %s4415_s4, %s3863_s29  ;;  %p3867_p8 = scmp.lt.u32.totalorder %s3863_s29, %s4415_s4 }
0x1f4f   :  { %p3869_p9 = pnand %p3867_p8, %p3864_p7 }
0x1f51   :  { %3872 = shalt.err (!%p3869_p9)
}
0x1f52   :  { %2927 = dma.vmem_to_hbm [thread:$0]  %s2925_s22, 32, %s4415_s4, [#allocation4]  }
0x1f53   :  { %3877 = dma.done.wait [#allocation4], 32  }
0x1f54   :  { %3878 = vsyncadd [#allocation4], 4294967264 }
0x1f55   :  { %2931 = vsyncpa [#allocation3], 1 }
0x1f56   :  { %2932 = vsyncpa [#allocation6], 1 }
0x1f57   :  { %2933 = vsyncpa [#allocation4], 1 }

</bundles_post_ra>
